<compile_context>
chip_gen: v7x
topology: tpu7x:2x2x1
jax: 0.10.0
libtpu: 0.0.40
codegen_flags: <defaults>
</compile_context>

<pallas_src>
import functools

import numpy as np
import jax
import jax.numpy as jnp
from jax.experimental import pallas as pl
from jax.experimental.pallas import tpu as pltpu

PAD = 0           # Constants.PAD
_LN_EPS = 1e-5    # nn.LayerNorm default
_NEG = -1e30      # finite "minus infinity" for masking

# Per-layer weight names, in kernel-unpack order.
W_NAMES = (
    "wqs", "bqs", "wks", "bks", "wvs", "bvs", "fws", "fbs", "g1", "be1",   # self-attn
    "wqc", "bqc", "wkc", "bkc", "wvc", "bvc", "fwc", "fbc", "g2", "be2",   # enc-dec attn
    "w1", "b1", "w2", "b2", "g3", "be3",                                   # FFN
)
# Weights that feed the MXU -> cast to bf16 at the pallas_call boundary.
_MXU_WEIGHTS = frozenset(
    ("wqs", "wks", "wvs", "fws", "wqc", "wkc", "wvc", "fwc", "w1", "w2"))


# ----------------------------------------------------------------------------
# Fused decoder-stack kernel (one grid step per layer).
# ----------------------------------------------------------------------------
def _decoder_stack_kernel(*refs, n_head, d_k, d_v, B, L, Ls):
    (x_ref, enc_ref, tpad_ref, spad_ref, npm_ref,
     wqs, bqs, wks, bks, wvs, bvs, fws, fbs, g1, be1,
     wqc, bqc, wkc, bkc, wvc, bvc, fwc, fbc, g2, be2,
     w1, b1, w2, b2, g3, be3,
     out_ref, slf_bias_ref, enc_bias_ref) = refs

    layer = pl.program_id(0)
    H = n_head

    @pl.when(layer == 0)
    def _init():
        # out_ref is the VMEM-resident residual stream (constant block index).
        out_ref[...] = x_ref[...]
        # Layer-invariant attention biases, built once (hoisted out of the
        # layer loop): subsequent + key-pad mask and enc-dec key-pad mask.
        row = jax.lax.broadcasted_iota(jnp.int32, (L, L), 0)
        col = jax.lax.broadcasted_iota(jnp.int32, (L, L), 1)
        subseq = (col > row)[None, :, :]                          # (1, L, L)
        keypad = tpad_ref[...][:, None, :] > 0.5                  # (B, 1, L)
        slf_bias_ref[...] = jnp.where(jnp.logical_or(subseq, keypad),
                                      jnp.float32(_NEG), jnp.float32(0.0))
        enc_bias_ref[...] = jnp.where(spad_ref[...] > 0.5,
                                      jnp.float32(_NEG), jnp.float32(0.0))

    x = out_ref[...]                       # (B*L, D) f32 residual stream
    enc_bf = enc_ref[...]                  # (B*Ls, D) bf16
    npm = npm_ref[...]                     # (B*L, 1) f32 non-pad column
    slf_bias = slf_bias_ref[...]                                   # (B, L, L)
    enc_bias = jnp.broadcast_to(enc_bias_ref[...][:, None, :], (B, L, Ls))

    inv_temp = 1.0 / float(np.sqrt(d_k))   # temperature = sqrt(d_k)

    def layer_norm(y, g, b):               # f32 stats
        mu = jnp.mean(y, axis=-1, keepdims=True)
        var = jnp.mean(jnp.square(y - mu), axis=-1, keepdims=True)
        return (y - mu) * jax.lax.rsqrt(var + _LN_EPS) * g + b

    def split_heads(y2d, Lx, dh):
        # (B*Lx, H*dh) f32 -> (H*B, Lx, dh) bf16, head-major on leading axis.
        parts = [y2d[:, h * dh:(h + 1) * dh].reshape(B, Lx, dh) for h in range(H)]
        return jnp.concatenate(parts, axis=0).astype(jnp.bfloat16)

    def merge_heads(o):
        # (H*B, L, d_v) f32 -> (B*L, H*d_v) f32, head-major on lane axis
        # (matches the PyTorch concat-heads layout feeding the fc layer).
        return jnp.concatenate(
            [o[h * B:(h + 1) * B].reshape(B * L, d_v) for h in range(H)], axis=-1)

    def mha(q_bf, kv_bf, Lk, wq, bq, wk, bk, wv, bv, fw, fb, bias):
        # Fused all-head projections: MXU N = H*d_k / H*d_v (lane-dense).
        q = jnp.dot(q_bf, wq[0], preferred_element_type=jnp.float32) + bq[0]
        k = jnp.dot(kv_bf, wk[0], preferred_element_type=jnp.float32) + bk[0]
        v = jnp.dot(kv_bf, wv[0], preferred_element_type=jnp.float32) + bv[0]
        qh = split_heads(q, L, d_k)          # (H*B, L,  d_k)
        kh = split_heads(k, Lk, d_k)         # (H*B, Lk, d_k)
        vh = split_heads(v, Lk, d_v)         # (H*B, Lk, d_v)
        bias_hb = jnp.concatenate([bias] * H, axis=0)              # (H*B, L, Lk)
        s = jnp.einsum("nqd,nkd->nqk", qh, kh,
                       preferred_element_type=jnp.float32)
        s = s * inv_temp + bias_hb
        m = jnp.max(s, axis=-1, keepdims=True)
        e = jnp.exp(s - m)
        p = e * pl.reciprocal(jnp.sum(e, axis=-1, keepdims=True), approx=True)
        o = jnp.einsum("nqk,nkd->nqd", p.astype(jnp.bfloat16), vh,
                       preferred_element_type=jnp.float32)          # (H*B, L, d_v)
        oc = merge_heads(o).astype(jnp.bfloat16)                    # (B*L, H*d_v)
        # Single concat-heads output projection (K = H*d_v).
        return jnp.dot(oc, fw[0], preferred_element_type=jnp.float32) + fb[0]

    # ---- sublayer 1: masked self-attention + residual + LN + non-pad mask ---
    x_bf = x.astype(jnp.bfloat16)
    a1 = mha(x_bf, x_bf, L, wqs, bqs, wks, bks, wvs, bvs, fws, fbs, slf_bias)
    y1 = layer_norm(a1 + x, g1[0], be1[0]) * npm

    # ---- sublayer 2: encoder-decoder attention ------------------------------
    a2 = mha(y1.astype(jnp.bfloat16), enc_bf, Ls,
             wqc, bqc, wkc, bkc, wvc, bvc, fwc, fbc, enc_bias)
    y2 = layer_norm(a2 + y1, g2[0], be2[0]) * npm

    # ---- sublayer 3: position-wise FFN (Conv1d k=1 == matmul) ---------------
    h1 = jnp.maximum(
        jnp.dot(y2.astype(jnp.bfloat16), w1[0],
                preferred_element_type=jnp.float32) + b1[0], 0.0)
    h2 = jnp.dot(h1.astype(jnp.bfloat16), w2[0],
                 preferred_element_type=jnp.float32) + b2[0]
    y3 = layer_norm(h2 + y2, g3[0], be3[0]) * npm

    out_ref[...] = y3                       # stays VMEM-resident for next layer


# ----------------------------------------------------------------------------
# Wrapper: one pallas_call for the whole layer stack.
# ----------------------------------------------------------------------------
def _layer_block_spec(w):
    tail = tuple(w.shape[1:])
    nz = (0,) * len(tail)
    return pl.BlockSpec((1,) + tail, lambda l, _z=nz: (l,) + _z)


def _pad_up(n, m=8):
    return -(-n // m) * m


def decoder_stack_pallas(dec_in, enc_output, tgt_seq, src_seq, params, *,
                         n_head, d_k, d_v):
    B, L0, D = dec_in.shape
    _, Ls0, _ = enc_output.shape
    n_layers = int(params["wqs"].shape[0])
    H = n_head
    d_inner = int(params["w1"].shape[-1])

    # Pad sequence lengths to sublane multiples (padding is masked out by the
    # key-pad bias and the non-pad mask, and sliced off the output).
    # TODO(synk): lane-dim padding of D / H*d_k / d_inner to 128 would change
    #             LayerNorm statistics and is left to the model config.
    L, Ls = _pad_up(L0), _pad_up(Ls0)
    if L != L0:
        dec_in = jnp.pad(dec_in, ((0, 0), (0, L - L0), (0, 0)))
        tgt_seq = jnp.pad(tgt_seq, ((0, 0), (0, L - L0)), constant_values=PAD)
    if Ls != Ls0:
        enc_output = jnp.pad(enc_output, ((0, 0), (0, Ls - Ls0), (0, 0)))
        src_seq = jnp.pad(src_seq, ((0, 0), (0, Ls - Ls0)), constant_values=PAD)

    x2 = dec_in.reshape(B * L, D).astype(jnp.float32)            # residual stream
    enc2 = enc_output.reshape(B * Ls, D).astype(jnp.bfloat16)    # MXU input only
    tpad = (tgt_seq == PAD).astype(jnp.float32)                  # (B, L)
    spad = (src_seq == PAD).astype(jnp.float32)                  # (B, Ls)
    npm = (1.0 - tpad).reshape(B * L, 1)                         # non-pad column

    # --- fuse per-head weights into lane-dense slabs ------------------------
    w = dict(params)
    for name in ("wqs", "wks", "wvs", "wqc", "wkc", "wvc"):
        a = params[name]                                  # (nl, H, D, dh)
        nl, Hh, Dd, dh = a.shape
        w[name] = a.transpose(0, 2, 1, 3).reshape(nl, Dd, Hh * dh)
    for name in ("bqs", "bks", "bvs", "bqc", "bkc", "bvc"):
        a = params[name]                                  # (nl, H, 1, dh)
        nl, Hh, _, dh = a.shape
        w[name] = a.reshape(nl, 1, Hh * dh)
    for name in ("fws", "fwc"):
        a = params[name]                                  # (nl, H, dv, D)
        nl, Hh, dv, Dd = a.shape
        w[name] = a.reshape(nl, Hh * dv, Dd)

    weights = [w[n].astype(jnp.bfloat16) if n in _MXU_WEIGHTS
               else w[n].astype(jnp.float32) for n in W_NAMES]

    in_specs = [
        pl.BlockSpec((B * L, D), lambda l: (0, 0)),    # decoder input (layer-0 init)
        pl.BlockSpec((B * Ls, D), lambda l: (0, 0)),   # encoder output (resident)
        pl.BlockSpec((B, L), lambda l: (0, 0)),        # tgt pad vector
        pl.BlockSpec((B, Ls), lambda l: (0, 0)),       # src pad vector
        pl.BlockSpec((B * L, 1), lambda l: (0, 0)),    # non-pad column
    ] + [_layer_block_spec(wt) for wt in weights]      # per-layer weight slabs

    # --- VMEM budget derived from the actual footprint ----------------------
    wbytes = sum(int(np.prod(wt.shape[1:])) * wt.dtype.itemsize for wt in weights)
    resident = (4 * 2 * B * L * D            # dec_in + resident residual stream
                + 2 * B * Ls * D             # encoder slab (bf16)
                + 4 * (B * L * L + B * Ls + B * L + B * (L + Ls)))  # biases/masks
    transient = 4 * B * L * (3 * H * max(d_k, d_v)     # q/k/v slabs
                             + 2 * H * max(L, Ls)      # scores + probs
                             + 2 * max(D, d_inner))    # attn out / FFN hidden
    vmem_limit = int(min(96 << 20,
                         max(32 << 20, 2 * wbytes + resident + 2 * transient)))

    kernel = functools.partial(_decoder_stack_kernel, n_head=H,
                               d_k=d_k, d_v=d_v, B=B, L=L, Ls=Ls)

    out = pl.pallas_call(
        kernel,
        out_shape=jax.ShapeDtypeStruct((B * L, D), jnp.float32),
        grid_spec=pltpu.PrefetchScalarGridSpec(
            num_scalar_prefetch=0,
            grid=(n_layers,),                           # layer axis: sequential
            in_specs=in_specs,
            out_specs=pl.BlockSpec((B * L, D), lambda l: (0, 0)),
            scratch_shapes=[pltpu.VMEM((B, L, L), jnp.float32),   # self-attn bias
                            pltpu.VMEM((B, Ls), jnp.float32)],    # enc-dec bias
        ),
        compiler_params=pltpu.CompilerParams(
            dimension_semantics=("arbitrary",),
            vmem_limit_bytes=vmem_limit,
        ),
    )(x2, enc2, tpad, spad, npm, *weights)
    return out.reshape(B, L, D)[:, :L0]


# ----------------------------------------------------------------------------
# Plain-JAX glue: embeddings, sinusoid table, parameter init.
# ----------------------------------------------------------------------------
def get_sinusoid_encoding_table(n_position, d_hid, padding_idx=None):
    pos = np.arange(n_position, dtype=np.float64)[:, None]
    hid = np.arange(d_hid, dtype=np.float64)[None, :]
    table = pos / np.power(10000.0, 2.0 * np.floor(hid / 2.0) / d_hid)
    table[:, 0::2] = np.sin(table[:, 0::2])
    table[:, 1::2] = np.cos(table[:, 1::2])
    if padding_idx is not None:
        table[padding_idx] = 0.0
    return jnp.asarray(table, dtype=jnp.float32)


def init_decoder_params(key, n_tgt_vocab, len_max_seq, d_word_vec,
                        n_layers, n_head, d_k, d_v, d_model, d_inner):
    kw, key = jax.random.split(key)
    word_emb = jax.random.normal(kw, (n_tgt_vocab, d_word_vec), jnp.float32) * 0.1
    word_emb = word_emb.at[PAD].set(0.0)                  # padding_idx=PAD
    pos_table = get_sinusoid_encoding_table(len_max_seq + 1, d_word_vec,
                                            padding_idx=0)

    def nrm(k, shape, fan_in):
        return jax.random.normal(k, shape, jnp.float32) / np.sqrt(fan_in)

    H, D = n_head, d_model
    per_layer = {name: [] for name in W_NAMES}
    for l in range(n_layers):
        ks = jax.random.split(jax.random.fold_in(key, l), 10)
        vals = dict(
            # self-attention (per-head weights on a leading axis)
            wqs=nrm(ks[0], (H, D, d_k), D), bqs=jnp.zeros((H, 1, d_k), jnp.float32),
            wks=nrm(ks[1], (H, D, d_k), D), bks=jnp.zeros((H, 1, d_k), jnp.float32),
            wvs=nrm(ks[2], (H, D, d_v), D), bvs=jnp.zeros((H, 1, d_v), jnp.float32),
            fws=nrm(ks[3], (H, d_v, D), H * d_v), fbs=jnp.zeros((1, D), jnp.float32),
            g1=jnp.ones((1, D), jnp.float32), be1=jnp.zeros((1, D), jnp.float32),
            # encoder-decoder attention
            wqc=nrm(ks[4], (H, D, d_k), D), bqc=jnp.zeros((H, 1, d_k), jnp.float32),
            wkc=nrm(ks[5], (H, D, d_k), D), bkc=jnp.zeros((H, 1, d_k), jnp.float32),
            wvc=nrm(ks[6], (H, D, d_v), D), bvc=jnp.zeros((H, 1, d_v), jnp.float32),
            fwc=nrm(ks[7], (H, d_v, D), H * d_v), fbc=jnp.zeros((1, D), jnp.float32),
            g2=jnp.ones((1, D), jnp.float32), be2=jnp.zeros((1, D), jnp.float32),
            # position-wise FFN
            w1=nrm(ks[8], (D, d_inner), D), b1=jnp.zeros((1, d_inner), jnp.float32),
            w2=nrm(ks[9], (d_inner, D), d_inner), b2=jnp.zeros((1, D), jnp.float32),
            g3=jnp.ones((1, D), jnp.float32), be3=jnp.zeros((1, D), jnp.float32),
        )
        for name in W_NAMES:
            per_layer[name].append(vals[name])
    params = {name: jnp.stack(per_layer[name], axis=0) for name in W_NAMES}
    return word_emb, pos_table, params


def decoder_forward(tgt_seq, tgt_pos, src_seq, enc_output,
                    word_emb, pos_table, params, *, n_head, d_k, d_v):
    dec_in = (jnp.take(word_emb, tgt_seq, axis=0)
              + jnp.take(pos_table, tgt_pos, axis=0))     # (B, L, D)
    return decoder_stack_pallas(dec_in, enc_output, tgt_seq, src_seq, params,
                                n_head=n_head, d_k=d_k, d_v=d_v)


# ----------------------------------------------------------------------------
if __name__ == "__main__":
    n_tgt_vocab, len_max_seq = 20, 8
    d_word_vec = d_model = 32
    n_layers, n_head, d_k, d_v, d_inner = 2, 2, 8, 8, 64
    B, L, Ls = 2, 8, 10

    key = jax.random.PRNGKey(0)
    word_emb, pos_table, params = init_decoder_params(
        key, n_tgt_vocab, len_max_seq, d_word_vec,
        n_layers, n_head, d_k, d_v, d_model, d_inner)

    # Deterministic token / position inputs (PAD = 0, positions 1..len).
    tgt_seq = jnp.array([[3, 5, 7, 2, 9, 4, 0, 0],
                         [11, 6, 1, 8, 0, 0, 0, 0]], dtype=jnp.int32)
    tgt_pos = jnp.array([[1, 2, 3, 4, 5, 6, 0, 0],
                         [1, 2, 3, 4, 0, 0, 0, 0]], dtype=jnp.int32)
    src_seq = jnp.array([[4, 8, 15, 16, 2, 3, 9, 1, 0, 0],
                         [7, 6, 5, 4, 3, 0, 0, 0, 0, 0]], dtype=jnp.int32)
    enc_output = jax.random.normal(jax.random.PRNGKey(1), (B, Ls, d_model),
                                   jnp.float32) * 0.5

    out = decoder_forward(tgt_seq, tgt_pos, src_seq, enc_output,
                          word_emb, pos_table, params,
                          n_head=n_head, d_k=d_k, d_v=d_v)
    out = jax.block_until_ready(out)

    assert out.shape == (B, L, d_model), out.shape
    assert bool(jnp.all(jnp.isfinite(out)))
    # padded target positions must be zeroed by the non-pad mask
    assert bool(jnp.all(out[0, 6:] == 0.0)) and bool(jnp.all(out[1, 4:] == 0.0))
    print("KERNEL_OK")
</pallas_src>

<mosaic_0001>
module attributes {stable_mosaic.version = 11 : i64} {
  func.func @_decoder_stack_kernel(%arg0: i32, %arg1: memref<16x32xf32, #tpu.memory_space<vmem>>, %arg2: memref<32x32xbf16, #tpu.memory_space<vmem>>, %arg3: memref<2x8xf32, #tpu.memory_space<vmem>>, %arg4: memref<2x16xf32, #tpu.memory_space<vmem>>, %arg5: memref<16x1xf32, #tpu.memory_space<vmem>>, %arg6: memref<1x32x16xbf16, #tpu.memory_space<vmem>>, %arg7: memref<1x1x16xf32, #tpu.memory_space<vmem>>, %arg8: memref<1x32x16xbf16, #tpu.memory_space<vmem>>, %arg9: memref<1x1x16xf32, #tpu.memory_space<vmem>>, %arg10: memref<1x32x16xbf16, #tpu.memory_space<vmem>>, %arg11: memref<1x1x16xf32, #tpu.memory_space<vmem>>, %arg12: memref<1x16x32xbf16, #tpu.memory_space<vmem>>, %arg13: memref<1x1x32xf32, #tpu.memory_space<vmem>>, %arg14: memref<1x1x32xf32, #tpu.memory_space<vmem>>, %arg15: memref<1x1x32xf32, #tpu.memory_space<vmem>>, %arg16: memref<1x32x16xbf16, #tpu.memory_space<vmem>>, %arg17: memref<1x1x16xf32, #tpu.memory_space<vmem>>, %arg18: memref<1x32x16xbf16, #tpu.memory_space<vmem>>, %arg19: memref<1x1x16xf32, #tpu.memory_space<vmem>>, %arg20: memref<1x32x16xbf16, #tpu.memory_space<vmem>>, %arg21: memref<1x1x16xf32, #tpu.memory_space<vmem>>, %arg22: memref<1x16x32xbf16, #tpu.memory_space<vmem>>, %arg23: memref<1x1x32xf32, #tpu.memory_space<vmem>>, %arg24: memref<1x1x32xf32, #tpu.memory_space<vmem>>, %arg25: memref<1x1x32xf32, #tpu.memory_space<vmem>>, %arg26: memref<1x32x64xbf16, #tpu.memory_space<vmem>>, %arg27: memref<1x1x64xf32, #tpu.memory_space<vmem>>, %arg28: memref<1x64x32xbf16, #tpu.memory_space<vmem>>, %arg29: memref<1x1x32xf32, #tpu.memory_space<vmem>>, %arg30: memref<1x1x32xf32, #tpu.memory_space<vmem>>, %arg31: memref<1x1x32xf32, #tpu.memory_space<vmem>>, %arg32: memref<16x32xf32, #tpu.memory_space<vmem>>, %arg33: memref<2x8x8xf32, #tpu.memory_space<vmem>>, %arg34: memref<2x16xf32, #tpu.memory_space<vmem>>) attributes {dimension_semantics = [#tpu.dimension_semantics<arbitrary>], iteration_bounds = array<i64: 2>, scalar_prefetch = 0 : i64, scratch_operands = 2 : i64, tpu.core_type = #tpu.core_type<tc>, window_params = [{pipeline_mode = #tpu.pipeline_mode<synchronous>, transform_indices = @transform_0, window_bounds = array<i64: 16, 32>}, {pipeline_mode = #tpu.pipeline_mode<synchronous>, transform_indices = @transform_1, window_bounds = array<i64: 32, 32>}, {pipeline_mode = #tpu.pipeline_mode<synchronous>, transform_indices = @transform_2, window_bounds = array<i64: 2, 8>}, {pipeline_mode = #tpu.pipeline_mode<synchronous>, transform_indices = @transform_3, window_bounds = array<i64: 2, 16>}, {pipeline_mode = #tpu.pipeline_mode<synchronous>, transform_indices = @transform_4, window_bounds = array<i64: 16, 1>}, {transform_indices = @transform_5, window_bounds = array<i64: 1, 32, 16>}, {transform_indices = @transform_6, window_bounds = array<i64: 1, 1, 16>}, {transform_indices = @transform_7, window_bounds = array<i64: 1, 32, 16>}, {transform_indices = @transform_8, window_bounds = array<i64: 1, 1, 16>}, {transform_indices = @transform_9, window_bounds = array<i64: 1, 32, 16>}, {transform_indices = @transform_10, window_bounds = array<i64: 1, 1, 16>}, {transform_indices = @transform_11, window_bounds = array<i64: 1, 16, 32>}, {transform_indices = @transform_12, window_bounds = array<i64: 1, 1, 32>}, {transform_indices = @transform_13, window_bounds = array<i64: 1, 1, 32>}, {transform_indices = @transform_14, window_bounds = array<i64: 1, 1, 32>}, {transform_indices = @transform_15, window_bounds = array<i64: 1, 32, 16>}, {transform_indices = @transform_16, window_bounds = array<i64: 1, 1, 16>}, {transform_indices = @transform_17, window_bounds = array<i64: 1, 32, 16>}, {transform_indices = @transform_18, window_bounds = array<i64: 1, 1, 16>}, {transform_indices = @transform_19, window_bounds = array<i64: 1, 32, 16>}, {transform_indices = @transform_20, window_bounds = array<i64: 1, 1, 16>}, {transform_indices = @transform_21, window_bounds = array<i64: 1, 16, 32>}, {transform_indices = @transform_22, window_bounds = array<i64: 1, 1, 32>}, {transform_indices = @transform_23, window_bounds = array<i64: 1, 1, 32>}, {transform_indices = @transform_24, window_bounds = array<i64: 1, 1, 32>}, {transform_indices = @transform_25, window_bounds = array<i64: 1, 32, 64>}, {transform_indices = @transform_26, window_bounds = array<i64: 1, 1, 64>}, {transform_indices = @transform_27, window_bounds = array<i64: 1, 64, 32>}, {transform_indices = @transform_28, window_bounds = array<i64: 1, 1, 32>}, {transform_indices = @transform_29, window_bounds = array<i64: 1, 1, 32>}, {transform_indices = @transform_30, window_bounds = array<i64: 1, 1, 32>}, {pipeline_mode = #tpu.pipeline_mode<synchronous>, transform_indices = @transform_31, window_bounds = array<i64: 16, 32>}]} {
    %c0_i32 = arith.constant 0 : i32
    %0 = arith.cmpi eq, %arg0, %c0_i32 : i32
    %1 = arith.extui %0 : i1 to i32
    %c0_i32_0 = arith.constant 0 : i32
    %2 = arith.cmpi ne, %1, %c0_i32_0 : i32
    scf.if %2 {
      %c0_126 = arith.constant 0 : index
      %c0_127 = arith.constant 0 : index
      %257 = vector.load %arg1[%c0_126, %c0_127] : memref<16x32xf32, #tpu.memory_space<vmem>>, vector<16x32xf32>
      %c0_128 = arith.constant 0 : index
      %c0_129 = arith.constant 0 : index
      %258 = vector.load %arg32[%c0_128, %c0_129] : memref<16x32xf32, #tpu.memory_space<vmem>>, vector<16x32xf32>
      tpu.vector_store %arg32[%c0_128, %c0_129], %257 {strides = array<i32>} : memref<16x32xf32, #tpu.memory_space<vmem>>, vector<16x32xf32>,
      %259 = tpu.iota {dimensions = array<i32: 0>} : vector<8x8xi32>
      %260 = tpu.iota {dimensions = array<i32: 1>} : vector<8x8xi32>
      %261 = arith.cmpi sgt, %260, %259 : vector<8x8xi32>
      %262 = vector.shape_cast %261 : vector<8x8xi1> to vector<1x8x8xi1>
      %c0_130 = arith.constant 0 : index
      %c0_131 = arith.constant 0 : index
      %263 = vector.load %arg3[%c0_130, %c0_131] : memref<2x8xf32, #tpu.memory_space<vmem>>, vector<2x8xf32>
      %264 = vector.shape_cast %263 : vector<2x8xf32> to vector<2x1x8xf32>
      %cst_132 = arith.constant 5.000000e-01 : f32
      %265 = vector.broadcast %cst_132 : f32 to vector<2x1x8xf32>
      %266 = arith.cmpf ogt, %264, %265 : vector<2x1x8xf32>
      %267 = vector.broadcast %262 : vector<1x8x8xi1> to vector<2x8x8xi1>
      %268 = vector.broadcast %266 : vector<2x1x8xi1> to vector<2x8x8xi1>
      %269 = arith.ori %267, %268 : vector<2x8x8xi1>
      %cst_133 = arith.constant -1.000000e+30 : f32
      %cst_134 = arith.constant 0.000000e+00 : f32
      %270 = vector.broadcast %cst_133 : f32 to vector<2x8x8xf32>
      %271 = vector.broadcast %cst_134 : f32 to vector<2x8x8xf32>
      %272 = arith.select %269, %270, %271 : vector<2x8x8xi1>, vector<2x8x8xf32>
      %c0_135 = arith.constant 0 : index
      %c0_136 = arith.constant 0 : index
      %c0_137 = arith.constant 0 : index
      %273 = vector.load %arg33[%c0_135, %c0_136, %c0_137] : memref<2x8x8xf32, #tpu.memory_space<vmem>>, vector<2x8x8xf32>
      tpu.vector_store %arg33[%c0_135, %c0_136, %c0_137], %272 {strides = array<i32>} : memref<2x8x8xf32, #tpu.memory_space<vmem>>, vector<2x8x8xf32>,
      %c0_138 = arith.constant 0 : index
      %c0_139 = arith.constant 0 : index
      %274 = vector.load %arg4[%c0_138, %c0_139] : memref<2x16xf32, #tpu.memory_space<vmem>>, vector<2x16xf32>
      %cst_140 = arith.constant 5.000000e-01 : f32
      %275 = vector.broadcast %cst_140 : f32 to vector<2x16xf32>
      %276 = arith.cmpf ogt, %274, %275 : vector<2x16xf32>
      %cst_141 = arith.constant -1.000000e+30 : f32
      %cst_142 = arith.constant 0.000000e+00 : f32
      %277 = vector.broadcast %cst_141 : f32 to vector<2x16xf32>
      %278 = vector.broadcast %cst_142 : f32 to vector<2x16xf32>
      %279 = arith.select %276, %277, %278 : vector<2x16xi1>, vector<2x16xf32>
      %c0_143 = arith.constant 0 : index
      %c0_144 = arith.constant 0 : index
      %280 = vector.load %arg34[%c0_143, %c0_144] : memref<2x16xf32, #tpu.memory_space<vmem>>, vector<2x16xf32>
      tpu.vector_store %arg34[%c0_143, %c0_144], %279 {strides = array<i32>} : memref<2x16xf32, #tpu.memory_space<vmem>>, vector<2x16xf32>,
    } else {
    }
    %c0 = arith.constant 0 : index
    %c0_1 = arith.constant 0 : index
    %3 = vector.load %arg32[%c0, %c0_1] : memref<16x32xf32, #tpu.memory_space<vmem>>, vector<16x32xf32>
    %c0_2 = arith.constant 0 : index
    %c0_3 = arith.constant 0 : index
    %4 = vector.load %arg2[%c0_2, %c0_3] : memref<32x32xbf16, #tpu.memory_space<vmem>>, vector<32x32xbf16>
    %c0_4 = arith.constant 0 : index
    %c0_5 = arith.constant 0 : index
    %5 = vector.load %arg5[%c0_4, %c0_5] : memref<16x1xf32, #tpu.memory_space<vmem>>, vector<16x1xf32>
    %c0_6 = arith.constant 0 : index
    %c0_7 = arith.constant 0 : index
    %c0_8 = arith.constant 0 : index
    %6 = vector.load %arg33[%c0_6, %c0_7, %c0_8] : memref<2x8x8xf32, #tpu.memory_space<vmem>>, vector<2x8x8xf32>
    %c0_9 = arith.constant 0 : index
    %c0_10 = arith.constant 0 : index
    %7 = vector.load %arg34[%c0_9, %c0_10] : memref<2x16xf32, #tpu.memory_space<vmem>>, vector<2x16xf32>
    %8 = vector.shape_cast %7 : vector<2x16xf32> to vector<2x1x16xf32>
    %9 = vector.shape_cast %8 : vector<2x1x16xf32> to vector<2x1x16xf32>
    %10 = vector.broadcast %9 : vector<2x1x16xf32> to vector<2x8x16xf32>
    %11 = arith.truncf %3 : vector<16x32xf32> to vector<16x32xbf16>
    %c0_11 = arith.constant 0 : index
    %c0_12 = arith.constant 0 : index
    %c0_13 = arith.constant 0 : index
    %12 = vector.load %arg6[%c0_11, %c0_12, %c0_13] : memref<1x32x16xbf16, #tpu.memory_space<vmem>>, vector<1x32x16xbf16>
    %13 = vector.shape_cast %12 : vector<1x32x16xbf16> to vector<32x16xbf16>
    %cst = arith.constant dense<0.000000e+00> : vector<16x16xf32>
    %14 = tpu.matmul %11, %13, %cst {dimension_numbers = #tpu.dot_dimension_numbers<[1], [0], [0], [1], [0, 0, 1, 1], [], []>} : vector<16x32xbf16>, vector<32x16xbf16>, vector<16x16xf32> -> vector<16x16xf32>
    %c0_14 = arith.constant 0 : index
    %c0_15 = arith.constant 0 : index
    %c0_16 = arith.constant 0 : index
    %15 = vector.load %arg7[%c0_14, %c0_15, %c0_16] : memref<1x1x16xf32, #tpu.memory_space<vmem>>, vector<1x1x16xf32>
    %16 = vector.shape_cast %15 : vector<1x1x16xf32> to vector<1x16xf32>
    %17 = vector.broadcast %16 : vector<1x16xf32> to vector<16x16xf32>
    %18 = arith.addf %14, %17 : vector<16x16xf32>
    %c0_17 = arith.constant 0 : index
    %c0_18 = arith.constant 0 : index
    %c0_19 = arith.constant 0 : index
    %19 = vector.load %arg8[%c0_17, %c0_18, %c0_19] : memref<1x32x16xbf16, #tpu.memory_space<vmem>>, vector<1x32x16xbf16>
    %20 = vector.shape_cast %19 : vector<1x32x16xbf16> to vector<32x16xbf16>
    %cst_20 = arith.constant dense<0.000000e+00> : vector<16x16xf32>
    %21 = tpu.matmul %11, %20, %cst_20 {dimension_numbers = #tpu.dot_dimension_numbers<[1], [0], [0], [1], [0, 0, 1, 1], [], []>} : vector<16x32xbf16>, vector<32x16xbf16>, vector<16x16xf32> -> vector<16x16xf32>
    %c0_21 = arith.constant 0 : index
    %c0_22 = arith.constant 0 : index
    %c0_23 = arith.constant 0 : index
    %22 = vector.load %arg9[%c0_21, %c0_22, %c0_23] : memref<1x1x16xf32, #tpu.memory_space<vmem>>, vector<1x1x16xf32>
    %23 = vector.shape_cast %22 : vector<1x1x16xf32> to vector<1x16xf32>
    %24 = vector.broadcast %23 : vector<1x16xf32> to vector<16x16xf32>
    %25 = arith.addf %21, %24 : vector<16x16xf32>
    %c0_24 = arith.constant 0 : index
    %c0_25 = arith.constant 0 : index
    %c0_26 = arith.constant 0 : index
    %26 = vector.load %arg10[%c0_24, %c0_25, %c0_26] : memref<1x32x16xbf16, #tpu.memory_space<vmem>>, vector<1x32x16xbf16>
    %27 = vector.shape_cast %26 : vector<1x32x16xbf16> to vector<32x16xbf16>
    %cst_27 = arith.constant dense<0.000000e+00> : vector<16x16xf32>
    %28 = tpu.matmul %11, %27, %cst_27 {dimension_numbers = #tpu.dot_dimension_numbers<[1], [0], [0], [1], [0, 0, 1, 1], [], []>} : vector<16x32xbf16>, vector<32x16xbf16>, vector<16x16xf32> -> vector<16x16xf32>
    %c0_28 = arith.constant 0 : index
    %c0_29 = arith.constant 0 : index
    %c0_30 = arith.constant 0 : index
    %29 = vector.load %arg11[%c0_28, %c0_29, %c0_30] : memref<1x1x16xf32, #tpu.memory_space<vmem>>, vector<1x1x16xf32>
    %30 = vector.shape_cast %29 : vector<1x1x16xf32> to vector<1x16xf32>
    %31 = vector.broadcast %30 : vector<1x16xf32> to vector<16x16xf32>
    %32 = arith.addf %28, %31 : vector<16x16xf32>
    %33 = vector.extract_strided_slice %18 {offsets = [0, 0], sizes = [16, 8], strides = [1, 1]} : vector<16x16xf32> to vector<16x8xf32>
    %34 = vector.shape_cast %33 : vector<16x8xf32> to vector<2x8x8xf32>
    %35 = vector.extract_strided_slice %18 {offsets = [0, 8], sizes = [16, 8], strides = [1, 1]} : vector<16x16xf32> to vector<16x8xf32>
    %36 = vector.shape_cast %35 : vector<16x8xf32> to vector<2x8x8xf32>
    %37 = tpu.concatenate %34, %36 in 0 : vector<2x8x8xf32>, vector<2x8x8xf32> -> vector<4x8x8xf32>
    %38 = arith.truncf %37 : vector<4x8x8xf32> to vector<4x8x8xbf16>
    %39 = vector.extract_strided_slice %25 {offsets = [0, 0], sizes = [16, 8], strides = [1, 1]} : vector<16x16xf32> to vector<16x8xf32>
    %40 = vector.shape_cast %39 : vector<16x8xf32> to vector<2x8x8xf32>
    %41 = vector.extract_strided_slice %25 {offsets = [0, 8], sizes = [16, 8], strides = [1, 1]} : vector<16x16xf32> to vector<16x8xf32>
    %42 = vector.shape_cast %41 : vector<16x8xf32> to vector<2x8x8xf32>
    %43 = tpu.concatenate %40, %42 in 0 : vector<2x8x8xf32>, vector<2x8x8xf32> -> vector<4x8x8xf32>
    %44 = arith.truncf %43 : vector<4x8x8xf32> to vector<4x8x8xbf16>
    %45 = vector.extract_strided_slice %32 {offsets = [0, 0], sizes = [16, 8], strides = [1, 1]} : vector<16x16xf32> to vector<16x8xf32>
    %46 = vector.shape_cast %45 : vector<16x8xf32> to vector<2x8x8xf32>
    %47 = vector.extract_strided_slice %32 {offsets = [0, 8], sizes = [16, 8], strides = [1, 1]} : vector<16x16xf32> to vector<16x8xf32>
    %48 = vector.shape_cast %47 : vector<16x8xf32> to vector<2x8x8xf32>
    %49 = tpu.concatenate %46, %48 in 0 : vector<2x8x8xf32>, vector<2x8x8xf32> -> vector<4x8x8xf32>
    %50 = arith.truncf %49 : vector<4x8x8xf32> to vector<4x8x8xbf16>
    %51 = tpu.concatenate %6, %6 in 0 : vector<2x8x8xf32>, vector<2x8x8xf32> -> vector<4x8x8xf32>
    "tpu.trace_start"() <{level = 10 : i32, message = "nqd,nkd->nqk"}> : () -> ()
    %cst_31 = arith.constant dense<0.000000e+00> : vector<4x8x8xf32>
    %52 = tpu.matmul %38, %44, %cst_31 {dimension_numbers = #tpu.dot_dimension_numbers<[2], [2], [1], [1], [0, 0, 0, 1, 1, 1], [0], [0]>} : vector<4x8x8xbf16>, vector<4x8x8xbf16>, vector<4x8x8xf32> -> vector<4x8x8xf32>
    "tpu.trace_stop"() : () -> ()
    %cst_32 = arith.constant 0.353553385 : f32
    %53 = vector.broadcast %cst_32 : f32 to vector<4x8x8xf32>
    %54 = arith.mulf %52, %53 : vector<4x8x8xf32>
    %55 = arith.addf %54, %51 : vector<4x8x8xf32>
    %cst_33 = arith.constant dense<0xFF800000> : vector<4x8xf32>
    %56 = vector.multi_reduction <maximumf>, %55, %cst_33 [2] : vector<4x8x8xf32> to vector<4x8xf32>
    %57 = vector.shape_cast %56 : vector<4x8xf32> to vector<4x8x1xf32>
    %58 = vector.broadcast %57 : vector<4x8x1xf32> to vector<4x8x8xf32>
    %59 = arith.subf %55, %58 : vector<4x8x8xf32>
    %60 = math.exp %59 : vector<4x8x8xf32>
    %cst_34 = arith.constant dense<0.000000e+00> : vector<4x8xf32>
    %61 = vector.multi_reduction <add>, %60, %cst_34 [2] : vector<4x8x8xf32> to vector<4x8xf32>
    %62 = vector.shape_cast %61 : vector<4x8xf32> to vector<4x8x1xf32>
    %63 = tpu.reciprocal %62 {approx = true} : vector<4x8x1xf32> -> vector<4x8x1xf32>
    %64 = vector.broadcast %63 : vector<4x8x1xf32> to vector<4x8x8xf32>
    %65 = arith.mulf %60, %64 : vector<4x8x8xf32>
    %66 = arith.truncf %65 : vector<4x8x8xf32> to vector<4x8x8xbf16>
    "tpu.trace_start"() <{level = 10 : i32, message = "nqk,nkd->nqd"}> : () -> ()
    %cst_35 = arith.constant dense<0.000000e+00> : vector<4x8x8xf32>
    %67 = tpu.matmul %66, %50, %cst_35 {dimension_numbers = #tpu.dot_dimension_numbers<[2], [1], [1], [2], [0, 0, 0, 1, 1, 2], [0], [0]>} : vector<4x8x8xbf16>, vector<4x8x8xbf16>, vector<4x8x8xf32> -> vector<4x8x8xf32>
    "tpu.trace_stop"() : () -> ()
    %68 = vector.extract_strided_slice %67 {offsets = [0, 0, 0], sizes = [2, 8, 8], strides = [1, 1, 1]} : vector<4x8x8xf32> to vector<2x8x8xf32>
    %69 = vector.shape_cast %68 : vector<2x8x8xf32> to vector<16x8xf32>
    %70 = vector.extract_strided_slice %67 {offsets = [2, 0, 0], sizes = [2, 8, 8], strides = [1, 1, 1]} : vector<4x8x8xf32> to vector<2x8x8xf32>
    %71 = vector.shape_cast %70 : vector<2x8x8xf32> to vector<16x8xf32>
    %72 = tpu.concatenate %69, %71 in 1 : vector<16x8xf32>, vector<16x8xf32> -> vector<16x16xf32>
    %73 = arith.truncf %72 : vector<16x16xf32> to vector<16x16xbf16>
    %c0_36 = arith.constant 0 : index
    %c0_37 = arith.constant 0 : index
    %c0_38 = arith.constant 0 : index
    %74 = vector.load %arg12[%c0_36, %c0_37, %c0_38] : memref<1x16x32xbf16, #tpu.memory_space<vmem>>, vector<1x16x32xbf16>
    %75 = vector.shape_cast %74 : vector<1x16x32xbf16> to vector<16x32xbf16>
    %cst_39 = arith.constant dense<0.000000e+00> : vector<16x32xf32>
    %76 = tpu.matmul %73, %75, %cst_39 {dimension_numbers = #tpu.dot_dimension_numbers<[1], [0], [0], [1], [0, 0, 1, 1], [], []>} : vector<16x16xbf16>, vector<16x32xbf16>, vector<16x32xf32> -> vector<16x32xf32>
    %c0_40 = arith.constant 0 : index
    %c0_41 = arith.constant 0 : index
    %c0_42 = arith.constant 0 : index
    %77 = vector.load %arg13[%c0_40, %c0_41, %c0_42] : memref<1x1x32xf32, #tpu.memory_space<vmem>>, vector<1x1x32xf32>
    %78 = vector.shape_cast %77 : vector<1x1x32xf32> to vector<1x32xf32>
    %79 = vector.broadcast %78 : vector<1x32xf32> to vector<16x32xf32>
    %80 = arith.addf %76, %79 : vector<16x32xf32>
    %81 = arith.addf %80, %3 : vector<16x32xf32>
    %c0_43 = arith.constant 0 : index
    %c0_44 = arith.constant 0 : index
    %c0_45 = arith.constant 0 : index
    %82 = vector.load %arg14[%c0_43, %c0_44, %c0_45] : memref<1x1x32xf32, #tpu.memory_space<vmem>>, vector<1x1x32xf32>
    %83 = vector.shape_cast %82 : vector<1x1x32xf32> to vector<1x32xf32>
    %c0_46 = arith.constant 0 : index
    %c0_47 = arith.constant 0 : index
    %c0_48 = arith.constant 0 : index
    %84 = vector.load %arg15[%c0_46, %c0_47, %c0_48] : memref<1x1x32xf32, #tpu.memory_space<vmem>>, vector<1x1x32xf32>
    %85 = vector.shape_cast %84 : vector<1x1x32xf32> to vector<1x32xf32>
    %cst_49 = arith.constant dense<0.000000e+00> : vector<16xf32>
    %86 = vector.multi_reduction <add>, %81, %cst_49 [1] : vector<16x32xf32> to vector<16xf32>
    %87 = vector.shape_cast %86 : vector<16xf32> to vector<16x1xf32>
    %cst_50 = arith.constant 3.200000e+01 : f32
    %88 = vector.broadcast %cst_50 : f32 to vector<16x1xf32>
    %89 = arith.divf %87, %88 : vector<16x1xf32>
    %90 = vector.broadcast %89 : vector<16x1xf32> to vector<16x32xf32>
    %91 = arith.subf %81, %90 : vector<16x32xf32>
    %92 = arith.mulf %91, %91 : vector<16x32xf32>
    %cst_51 = arith.constant dense<0.000000e+00> : vector<16xf32>
    %93 = vector.multi_reduction <add>, %92, %cst_51 [1] : vector<16x32xf32> to vector<16xf32>
    %94 = vector.shape_cast %93 : vector<16xf32> to vector<16x1xf32>
    %cst_52 = arith.constant 3.200000e+01 : f32
    %95 = vector.broadcast %cst_52 : f32 to vector<16x1xf32>
    %96 = arith.divf %94, %95 : vector<16x1xf32>
    %97 = vector.broadcast %89 : vector<16x1xf32> to vector<16x32xf32>
    %98 = arith.subf %81, %97 : vector<16x32xf32>
    %cst_53 = arith.constant 9.99999974E-6 : f32
    %99 = vector.broadcast %cst_53 : f32 to vector<16x1xf32>
    %100 = arith.addf %96, %99 : vector<16x1xf32>
    %101 = math.rsqrt %100 : vector<16x1xf32>
    %102 = vector.broadcast %101 : vector<16x1xf32> to vector<16x32xf32>
    %103 = arith.mulf %98, %102 : vector<16x32xf32>
    %104 = vector.broadcast %83 : vector<1x32xf32> to vector<16x32xf32>
    %105 = arith.mulf %103, %104 : vector<16x32xf32>
    %106 = vector.broadcast %85 : vector<1x32xf32> to vector<16x32xf32>
    %107 = arith.addf %105, %106 : vector<16x32xf32>
    %108 = vector.broadcast %5 : vector<16x1xf32> to vector<16x32xf32>
    %109 = arith.mulf %107, %108 : vector<16x32xf32>
    %110 = arith.truncf %109 : vector<16x32xf32> to vector<16x32xbf16>
    %c0_54 = arith.constant 0 : index
    %c0_55 = arith.constant 0 : index
    %c0_56 = arith.constant 0 : index
    %111 = vector.load %arg16[%c0_54, %c0_55, %c0_56] : memref<1x32x16xbf16, #tpu.memory_space<vmem>>, vector<1x32x16xbf16>
    %112 = vector.shape_cast %111 : vector<1x32x16xbf16> to vector<32x16xbf16>
    %cst_57 = arith.constant dense<0.000000e+00> : vector<16x16xf32>
    %113 = tpu.matmul %110, %112, %cst_57 {dimension_numbers = #tpu.dot_dimension_numbers<[1], [0], [0], [1], [0, 0, 1, 1], [], []>} : vector<16x32xbf16>, vector<32x16xbf16>, vector<16x16xf32> -> vector<16x16xf32>
    %c0_58 = arith.constant 0 : index
    %c0_59 = arith.constant 0 : index
    %c0_60 = arith.constant 0 : index
    %114 = vector.load %arg17[%c0_58, %c0_59, %c0_60] : memref<1x1x16xf32, #tpu.memory_space<vmem>>, vector<1x1x16xf32>
    %115 = vector.shape_cast %114 : vector<1x1x16xf32> to vector<1x16xf32>
    %116 = vector.broadcast %115 : vector<1x16xf32> to vector<16x16xf32>
    %117 = arith.addf %113, %116 : vector<16x16xf32>
    %c0_61 = arith.constant 0 : index
    %c0_62 = arith.constant 0 : index
    %c0_63 = arith.constant 0 : index
    %118 = vector.load %arg18[%c0_61, %c0_62, %c0_63] : memref<1x32x16xbf16, #tpu.memory_space<vmem>>, vector<1x32x16xbf16>
    %119 = vector.shape_cast %118 : vector<1x32x16xbf16> to vector<32x16xbf16>
    %cst_64 = arith.constant dense<0.000000e+00> : vector<32x16xf32>
    %120 = tpu.matmul %4, %119, %cst_64 {dimension_numbers = #tpu.dot_dimension_numbers<[1], [0], [0], [1], [0, 0, 1, 1], [], []>} : vector<32x32xbf16>, vector<32x16xbf16>, vector<32x16xf32> -> vector<32x16xf32>
    %c0_65 = arith.constant 0 : index
    %c0_66 = arith.constant 0 : index
    %c0_67 = arith.constant 0 : index
    %121 = vector.load %arg19[%c0_65, %c0_66, %c0_67] : memref<1x1x16xf32, #tpu.memory_space<vmem>>, vector<1x1x16xf32>
    %122 = vector.shape_cast %121 : vector<1x1x16xf32> to vector<1x16xf32>
    %123 = vector.broadcast %122 : vector<1x16xf32> to vector<32x16xf32>
    %124 = arith.addf %120, %123 : vector<32x16xf32>
    %c0_68 = arith.constant 0 : index
    %c0_69 = arith.constant 0 : index
    %c0_70 = arith.constant 0 : index
    %125 = vector.load %arg20[%c0_68, %c0_69, %c0_70] : memref<1x32x16xbf16, #tpu.memory_space<vmem>>, vector<1x32x16xbf16>
    %126 = vector.shape_cast %125 : vector<1x32x16xbf16> to vector<32x16xbf16>
    %cst_71 = arith.constant dense<0.000000e+00> : vector<32x16xf32>
    %127 = tpu.matmul %4, %126, %cst_71 {dimension_numbers = #tpu.dot_dimension_numbers<[1], [0], [0], [1], [0, 0, 1, 1], [], []>} : vector<32x32xbf16>, vector<32x16xbf16>, vector<32x16xf32> -> vector<32x16xf32>
    %c0_72 = arith.constant 0 : index
    %c0_73 = arith.constant 0 : index
    %c0_74 = arith.constant 0 : index
    %128 = vector.load %arg21[%c0_72, %c0_73, %c0_74] : memref<1x1x16xf32, #tpu.memory_space<vmem>>, vector<1x1x16xf32>
    %129 = vector.shape_cast %128 : vector<1x1x16xf32> to vector<1x16xf32>
    %130 = vector.broadcast %129 : vector<1x16xf32> to vector<32x16xf32>
    %131 = arith.addf %127, %130 : vector<32x16xf32>
    %132 = vector.extract_strided_slice %117 {offsets = [0, 0], sizes = [16, 8], strides = [1, 1]} : vector<16x16xf32> to vector<16x8xf32>
    %133 = vector.shape_cast %132 : vector<16x8xf32> to vector<2x8x8xf32>
    %134 = vector.extract_strided_slice %117 {offsets = [0, 8], sizes = [16, 8], strides = [1, 1]} : vector<16x16xf32> to vector<16x8xf32>
    %135 = vector.shape_cast %134 : vector<16x8xf32> to vector<2x8x8xf32>
    %136 = tpu.concatenate %133, %135 in 0 : vector<2x8x8xf32>, vector<2x8x8xf32> -> vector<4x8x8xf32>
    %137 = arith.truncf %136 : vector<4x8x8xf32> to vector<4x8x8xbf16>
    %138 = vector.extract_strided_slice %124 {offsets = [0, 0], sizes = [32, 8], strides = [1, 1]} : vector<32x16xf32> to vector<32x8xf32>
    %139 = vector.shape_cast %138 : vector<32x8xf32> to vector<2x16x8xf32>
    %140 = vector.extract_strided_slice %124 {offsets = [0, 8], sizes = [32, 8], strides = [1, 1]} : vector<32x16xf32> to vector<32x8xf32>
    %141 = vector.shape_cast %140 : vector<32x8xf32> to vector<2x16x8xf32>
    %142 = tpu.concatenate %139, %141 in 0 : vector<2x16x8xf32>, vector<2x16x8xf32> -> vector<4x16x8xf32>
    %143 = arith.truncf %142 : vector<4x16x8xf32> to vector<4x16x8xbf16>
    %144 = vector.extract_strided_slice %131 {offsets = [0, 0], sizes = [32, 8], strides = [1, 1]} : vector<32x16xf32> to vector<32x8xf32>
    %145 = vector.shape_cast %144 : vector<32x8xf32> to vector<2x16x8xf32>
    %146 = vector.extract_strided_slice %131 {offsets = [0, 8], sizes = [32, 8], strides = [1, 1]} : vector<32x16xf32> to vector<32x8xf32>
    %147 = vector.shape_cast %146 : vector<32x8xf32> to vector<2x16x8xf32>
    %148 = tpu.concatenate %145, %147 in 0 : vector<2x16x8xf32>, vector<2x16x8xf32> -> vector<4x16x8xf32>
    %149 = arith.truncf %148 : vector<4x16x8xf32> to vector<4x16x8xbf16>
    %150 = tpu.concatenate %10, %10 in 0 : vector<2x8x16xf32>, vector<2x8x16xf32> -> vector<4x8x16xf32>
    "tpu.trace_start"() <{level = 10 : i32, message = "nqd,nkd->nqk"}> : () -> ()
    %cst_75 = arith.constant dense<0.000000e+00> : vector<4x8x16xf32>
    %151 = tpu.matmul %137, %143, %cst_75 {dimension_numbers = #tpu.dot_dimension_numbers<[2], [2], [1], [1], [0, 0, 0, 1, 1, 1], [0], [0]>} : vector<4x8x8xbf16>, vector<4x16x8xbf16>, vector<4x8x16xf32> -> vector<4x8x16xf32>
    "tpu.trace_stop"() : () -> ()
    %cst_76 = arith.constant 0.353553385 : f32
    %152 = vector.broadcast %cst_76 : f32 to vector<4x8x16xf32>
    %153 = arith.mulf %151, %152 : vector<4x8x16xf32>
    %154 = arith.addf %153, %150 : vector<4x8x16xf32>
    %cst_77 = arith.constant dense<0xFF800000> : vector<4x8xf32>
    %155 = vector.multi_reduction <maximumf>, %154, %cst_77 [2] : vector<4x8x16xf32> to vector<4x8xf32>
    %156 = vector.shape_cast %155 : vector<4x8xf32> to vector<4x8x1xf32>
    %157 = vector.broadcast %156 : vector<4x8x1xf32> to vector<4x8x16xf32>
    %158 = arith.subf %154, %157 : vector<4x8x16xf32>
    %159 = math.exp %158 : vector<4x8x16xf32>
    %cst_78 = arith.constant dense<0.000000e+00> : vector<4x8xf32>
    %160 = vector.multi_reduction <add>, %159, %cst_78 [2] : vector<4x8x16xf32> to vector<4x8xf32>
    %161 = vector.shape_cast %160 : vector<4x8xf32> to vector<4x8x1xf32>
    %162 = tpu.reciprocal %161 {approx = true} : vector<4x8x1xf32> -> vector<4x8x1xf32>
    %163 = vector.broadcast %162 : vector<4x8x1xf32> to vector<4x8x16xf32>
    %164 = arith.mulf %159, %163 : vector<4x8x16xf32>
    %165 = arith.truncf %164 : vector<4x8x16xf32> to vector<4x8x16xbf16>
    "tpu.trace_start"() <{level = 10 : i32, message = "nqk,nkd->nqd"}> : () -> ()
    %cst_79 = arith.constant dense<0.000000e+00> : vector<4x8x8xf32>
    %166 = tpu.matmul %165, %149, %cst_79 {dimension_numbers = #tpu.dot_dimension_numbers<[2], [1], [1], [2], [0, 0, 0, 1, 1, 2], [0], [0]>} : vector<4x8x16xbf16>, vector<4x16x8xbf16>, vector<4x8x8xf32> -> vector<4x8x8xf32>
    "tpu.trace_stop"() : () -> ()
    %167 = vector.extract_strided_slice %166 {offsets = [0, 0, 0], sizes = [2, 8, 8], strides = [1, 1, 1]} : vector<4x8x8xf32> to vector<2x8x8xf32>
    %168 = vector.shape_cast %167 : vector<2x8x8xf32> to vector<16x8xf32>
    %169 = vector.extract_strided_slice %166 {offsets = [2, 0, 0], sizes = [2, 8, 8], strides = [1, 1, 1]} : vector<4x8x8xf32> to vector<2x8x8xf32>
    %170 = vector.shape_cast %169 : vector<2x8x8xf32> to vector<16x8xf32>
    %171 = tpu.concatenate %168, %170 in 1 : vector<16x8xf32>, vector<16x8xf32> -> vector<16x16xf32>
    %172 = arith.truncf %171 : vector<16x16xf32> to vector<16x16xbf16>
    %c0_80 = arith.constant 0 : index
    %c0_81 = arith.constant 0 : index
    %c0_82 = arith.constant 0 : index
    %173 = vector.load %arg22[%c0_80, %c0_81, %c0_82] : memref<1x16x32xbf16, #tpu.memory_space<vmem>>, vector<1x16x32xbf16>
    %174 = vector.shape_cast %173 : vector<1x16x32xbf16> to vector<16x32xbf16>
    %cst_83 = arith.constant dense<0.000000e+00> : vector<16x32xf32>
    %175 = tpu.matmul %172, %174, %cst_83 {dimension_numbers = #tpu.dot_dimension_numbers<[1], [0], [0], [1], [0, 0, 1, 1], [], []>} : vector<16x16xbf16>, vector<16x32xbf16>, vector<16x32xf32> -> vector<16x32xf32>
    %c0_84 = arith.constant 0 : index
    %c0_85 = arith.constant 0 : index
    %c0_86 = arith.constant 0 : index
    %176 = vector.load %arg23[%c0_84, %c0_85, %c0_86] : memref<1x1x32xf32, #tpu.memory_space<vmem>>, vector<1x1x32xf32>
    %177 = vector.shape_cast %176 : vector<1x1x32xf32> to vector<1x32xf32>
    %178 = vector.broadcast %177 : vector<1x32xf32> to vector<16x32xf32>
    %179 = arith.addf %175, %178 : vector<16x32xf32>
    %180 = arith.addf %179, %109 : vector<16x32xf32>
    %c0_87 = arith.constant 0 : index
    %c0_88 = arith.constant 0 : index
    %c0_89 = arith.constant 0 : index
    %181 = vector.load %arg24[%c0_87, %c0_88, %c0_89] : memref<1x1x32xf32, #tpu.memory_space<vmem>>, vector<1x1x32xf32>
    %182 = vector.shape_cast %181 : vector<1x1x32xf32> to vector<1x32xf32>
    %c0_90 = arith.constant 0 : index
    %c0_91 = arith.constant 0 : index
    %c0_92 = arith.constant 0 : index
    %183 = vector.load %arg25[%c0_90, %c0_91, %c0_92] : memref<1x1x32xf32, #tpu.memory_space<vmem>>, vector<1x1x32xf32>
    %184 = vector.shape_cast %183 : vector<1x1x32xf32> to vector<1x32xf32>
    %cst_93 = arith.constant dense<0.000000e+00> : vector<16xf32>
    %185 = vector.multi_reduction <add>, %180, %cst_93 [1] : vector<16x32xf32> to vector<16xf32>
    %186 = vector.shape_cast %185 : vector<16xf32> to vector<16x1xf32>
    %cst_94 = arith.constant 3.200000e+01 : f32
    %187 = vector.broadcast %cst_94 : f32 to vector<16x1xf32>
    %188 = arith.divf %186, %187 : vector<16x1xf32>
    %189 = vector.broadcast %188 : vector<16x1xf32> to vector<16x32xf32>
    %190 = arith.subf %180, %189 : vector<16x32xf32>
    %191 = arith.mulf %190, %190 : vector<16x32xf32>
    %cst_95 = arith.constant dense<0.000000e+00> : vector<16xf32>
    %192 = vector.multi_reduction <add>, %191, %cst_95 [1] : vector<16x32xf32> to vector<16xf32>
    %193 = vector.shape_cast %192 : vector<16xf32> to vector<16x1xf32>
    %cst_96 = arith.constant 3.200000e+01 : f32
    %194 = vector.broadcast %cst_96 : f32 to vector<16x1xf32>
    %195 = arith.divf %193, %194 : vector<16x1xf32>
    %196 = vector.broadcast %188 : vector<16x1xf32> to vector<16x32xf32>
    %197 = arith.subf %180, %196 : vector<16x32xf32>
    %cst_97 = arith.constant 9.99999974E-6 : f32
    %198 = vector.broadcast %cst_97 : f32 to vector<16x1xf32>
    %199 = arith.addf %195, %198 : vector<16x1xf32>
    %200 = math.rsqrt %199 : vector<16x1xf32>
    %201 = vector.broadcast %200 : vector<16x1xf32> to vector<16x32xf32>
    %202 = arith.mulf %197, %201 : vector<16x32xf32>
    %203 = vector.broadcast %182 : vector<1x32xf32> to vector<16x32xf32>
    %204 = arith.mulf %202, %203 : vector<16x32xf32>
    %205 = vector.broadcast %184 : vector<1x32xf32> to vector<16x32xf32>
    %206 = arith.addf %204, %205 : vector<16x32xf32>
    %207 = vector.broadcast %5 : vector<16x1xf32> to vector<16x32xf32>
    %208 = arith.mulf %206, %207 : vector<16x32xf32>
    %209 = arith.truncf %208 : vector<16x32xf32> to vector<16x32xbf16>
    %c0_98 = arith.constant 0 : index
    %c0_99 = arith.constant 0 : index
    %c0_100 = arith.constant 0 : index
    %210 = vector.load %arg26[%c0_98, %c0_99, %c0_100] : memref<1x32x64xbf16, #tpu.memory_space<vmem>>, vector<1x32x64xbf16>
    %211 = vector.shape_cast %210 : vector<1x32x64xbf16> to vector<32x64xbf16>
    %cst_101 = arith.constant dense<0.000000e+00> : vector<16x64xf32>
    %212 = tpu.matmul %209, %211, %cst_101 {dimension_numbers = #tpu.dot_dimension_numbers<[1], [0], [0], [1], [0, 0, 1, 1], [], []>} : vector<16x32xbf16>, vector<32x64xbf16>, vector<16x64xf32> -> vector<16x64xf32>
    %c0_102 = arith.constant 0 : index
    %c0_103 = arith.constant 0 : index
    %c0_104 = arith.constant 0 : index
    %213 = vector.load %arg27[%c0_102, %c0_103, %c0_104] : memref<1x1x64xf32, #tpu.memory_space<vmem>>, vector<1x1x64xf32>
    %214 = vector.shape_cast %213 : vector<1x1x64xf32> to vector<1x64xf32>
    %215 = vector.broadcast %214 : vector<1x64xf32> to vector<16x64xf32>
    %216 = arith.addf %212, %215 : vector<16x64xf32>
    %cst_105 = arith.constant 0.000000e+00 : f32
    %217 = vector.broadcast %cst_105 : f32 to vector<16x64xf32>
    %218 = arith.maximumf %216, %217 : vector<16x64xf32>
    %219 = arith.truncf %218 : vector<16x64xf32> to vector<16x64xbf16>
    %c0_106 = arith.constant 0 : index
    %c0_107 = arith.constant 0 : index
    %c0_108 = arith.constant 0 : index
    %220 = vector.load %arg28[%c0_106, %c0_107, %c0_108] : memref<1x64x32xbf16, #tpu.memory_space<vmem>>, vector<1x64x32xbf16>
    %221 = vector.shape_cast %220 : vector<1x64x32xbf16> to vector<64x32xbf16>
    %cst_109 = arith.constant dense<0.000000e+00> : vector<16x32xf32>
    %222 = tpu.matmul %219, %221, %cst_109 {dimension_numbers = #tpu.dot_dimension_numbers<[1], [0], [0], [1], [0, 0, 1, 1], [], []>} : vector<16x64xbf16>, vector<64x32xbf16>, vector<16x32xf32> -> vector<16x32xf32>
    %c0_110 = arith.constant 0 : index
    %c0_111 = arith.constant 0 : index
    %c0_112 = arith.constant 0 : index
    %223 = vector.load %arg29[%c0_110, %c0_111, %c0_112] : memref<1x1x32xf32, #tpu.memory_space<vmem>>, vector<1x1x32xf32>
    %224 = vector.shape_cast %223 : vector<1x1x32xf32> to vector<1x32xf32>
    %225 = vector.broadcast %224 : vector<1x32xf32> to vector<16x32xf32>
    %226 = arith.addf %222, %225 : vector<16x32xf32>
    %227 = arith.addf %226, %208 : vector<16x32xf32>
    %c0_113 = arith.constant 0 : index
    %c0_114 = arith.constant 0 : index
    %c0_115 = arith.constant 0 : index
    %228 = vector.load %arg30[%c0_113, %c0_114, %c0_115] : memref<1x1x32xf32, #tpu.memory_space<vmem>>, vector<1x1x32xf32>
    %229 = vector.shape_cast %228 : vector<1x1x32xf32> to vector<1x32xf32>
    %c0_116 = arith.constant 0 : index
    %c0_117 = arith.constant 0 : index
    %c0_118 = arith.constant 0 : index
    %230 = vector.load %arg31[%c0_116, %c0_117, %c0_118] : memref<1x1x32xf32, #tpu.memory_space<vmem>>, vector<1x1x32xf32>
    %231 = vector.shape_cast %230 : vector<1x1x32xf32> to vector<1x32xf32>
    %cst_119 = arith.constant dense<0.000000e+00> : vector<16xf32>
    %232 = vector.multi_reduction <add>, %227, %cst_119 [1] : vector<16x32xf32> to vector<16xf32>
    %233 = vector.shape_cast %232 : vector<16xf32> to vector<16x1xf32>
    %cst_120 = arith.constant 3.200000e+01 : f32
    %234 = vector.broadcast %cst_120 : f32 to vector<16x1xf32>
    %235 = arith.divf %233, %234 : vector<16x1xf32>
    %236 = vector.broadcast %235 : vector<16x1xf32> to vector<16x32xf32>
    %237 = arith.subf %227, %236 : vector<16x32xf32>
    %238 = arith.mulf %237, %237 : vector<16x32xf32>
    %cst_121 = arith.constant dense<0.000000e+00> : vector<16xf32>
    %239 = vector.multi_reduction <add>, %238, %cst_121 [1] : vector<16x32xf32> to vector<16xf32>
    %240 = vector.shape_cast %239 : vector<16xf32> to vector<16x1xf32>
    %cst_122 = arith.constant 3.200000e+01 : f32
    %241 = vector.broadcast %cst_122 : f32 to vector<16x1xf32>
    %242 = arith.divf %240, %241 : vector<16x1xf32>
    %243 = vector.broadcast %235 : vector<16x1xf32> to vector<16x32xf32>
    %244 = arith.subf %227, %243 : vector<16x32xf32>
    %cst_123 = arith.constant 9.99999974E-6 : f32
    %245 = vector.broadcast %cst_123 : f32 to vector<16x1xf32>
    %246 = arith.addf %242, %245 : vector<16x1xf32>
    %247 = math.rsqrt %246 : vector<16x1xf32>
    %248 = vector.broadcast %247 : vector<16x1xf32> to vector<16x32xf32>
    %249 = arith.mulf %244, %248 : vector<16x32xf32>
    %250 = vector.broadcast %229 : vector<1x32xf32> to vector<16x32xf32>
    %251 = arith.mulf %249, %250 : vector<16x32xf32>
    %252 = vector.broadcast %231 : vector<1x32xf32> to vector<16x32xf32>
    %253 = arith.addf %251, %252 : vector<16x32xf32>
    %254 = vector.broadcast %5 : vector<16x1xf32> to vector<16x32xf32>
    %255 = arith.mulf %253, %254 : vector<16x32xf32>
    %c0_124 = arith.constant 0 : index
    %c0_125 = arith.constant 0 : index
    %256 = vector.load %arg32[%c0_124, %c0_125] : memref<16x32xf32, #tpu.memory_space<vmem>>, vector<16x32xf32>
    tpu.vector_store %arg32[%c0_124, %c0_125], %255 {strides = array<i32>} : memref<16x32xf32, #tpu.memory_space<vmem>>, vector<16x32xf32>,
    return
  }
  func.func @transform_0(%arg0: i32) -> (i32, i32) {
    %c0_i32 = arith.constant 0 : i32
    %c0_i32_0 = arith.constant 0 : i32
    %c0_i32_1 = arith.constant 0 : i32
    return %c0_i32, %c0_i32_0 : i32, i32
  }
  func.func @transform_1(%arg0: i32) -> (i32, i32) {
    %c0_i32 = arith.constant 0 : i32
    %c0_i32_0 = arith.constant 0 : i32
    %c0_i32_1 = arith.constant 0 : i32
    return %c0_i32, %c0_i32_0 : i32, i32
  }
  func.func @transform_2(%arg0: i32) -> (i32, i32) {
    %c0_i32 = arith.constant 0 : i32
    %c0_i32_0 = arith.constant 0 : i32
    %c0_i32_1 = arith.constant 0 : i32
    return %c0_i32, %c0_i32_0 : i32, i32
  }
  func.func @transform_3(%arg0: i32) -> (i32, i32) {
    %c0_i32 = arith.constant 0 : i32
    %c0_i32_0 = arith.constant 0 : i32
    %c0_i32_1 = arith.constant 0 : i32
    return %c0_i32, %c0_i32_0 : i32, i32
  }
  func.func @transform_4(%arg0: i32) -> (i32, i32) {
    %c0_i32 = arith.constant 0 : i32
    %c0_i32_0 = arith.constant 0 : i32
    %c0_i32_1 = arith.constant 0 : i32
    return %c0_i32, %c0_i32_0 : i32, i32
  }
  func.func @transform_5(%arg0: i32) -> (i32, i32, i32) {
    %c0_i32 = arith.constant 0 : i32
    %c0_i32_0 = arith.constant 0 : i32
    %c0_i32_1 = arith.constant 0 : i32
    return %arg0, %c0_i32, %c0_i32_0 : i32, i32, i32
  }
  func.func @transform_6(%arg0: i32) -> (i32, i32, i32) {
    %c0_i32 = arith.constant 0 : i32
    %c0_i32_0 = arith.constant 0 : i32
    %c0_i32_1 = arith.constant 0 : i32
    return %arg0, %c0_i32, %c0_i32_0 : i32, i32, i32
  }
  func.func @transform_7(%arg0: i32) -> (i32, i32, i32) {
    %c0_i32 = arith.constant 0 : i32
    %c0_i32_0 = arith.constant 0 : i32
    %c0_i32_1 = arith.constant 0 : i32
    return %arg0, %c0_i32, %c0_i32_0 : i32, i32, i32
  }
  func.func @transform_8(%arg0: i32) -> (i32, i32, i32) {
    %c0_i32 = arith.constant 0 : i32
    %c0_i32_0 = arith.constant 0 : i32
    %c0_i32_1 = arith.constant 0 : i32
    return %arg0, %c0_i32, %c0_i32_0 : i32, i32, i32
  }
  func.func @transform_9(%arg0: i32) -> (i32, i32, i32) {
    %c0_i32 = arith.constant 0 : i32
    %c0_i32_0 = arith.constant 0 : i32
    %c0_i32_1 = arith.constant 0 : i32
    return %arg0, %c0_i32, %c0_i32_0 : i32, i32, i32
  }
  func.func @transform_10(%arg0: i32) -> (i32, i32, i32) {
    %c0_i32 = arith.constant 0 : i32
    %c0_i32_0 = arith.constant 0 : i32
    %c0_i32_1 = arith.constant 0 : i32
    return %arg0, %c0_i32, %c0_i32_0 : i32, i32, i32
  }
  func.func @transform_11(%arg0: i32) -> (i32, i32, i32) {
    %c0_i32 = arith.constant 0 : i32
    %c0_i32_0 = arith.constant 0 : i32
    %c0_i32_1 = arith.constant 0 : i32
    return %arg0, %c0_i32, %c0_i32_0 : i32, i32, i32
  }
  func.func @transform_12(%arg0: i32) -> (i32, i32, i32) {
    %c0_i32 = arith.constant 0 : i32
    %c0_i32_0 = arith.constant 0 : i32
    %c0_i32_1 = arith.constant 0 : i32
    return %arg0, %c0_i32, %c0_i32_0 : i32, i32, i32
  }
  func.func @transform_13(%arg0: i32) -> (i32, i32, i32) {
    %c0_i32 = arith.constant 0 : i32
    %c0_i32_0 = arith.constant 0 : i32
    %c0_i32_1 = arith.constant 0 : i32
    return %arg0, %c0_i32, %c0_i32_0 : i32, i32, i32
  }
  func.func @transform_14(%arg0: i32) -> (i32, i32, i32) {
    %c0_i32 = arith.constant 0 : i32
    %c0_i32_0 = arith.constant 0 : i32
    %c0_i32_1 = arith.constant 0 : i32
    return %arg0, %c0_i32, %c0_i32_0 : i32, i32, i32
  }
  func.func @transform_15(%arg0: i32) -> (i32, i32, i32) {
    %c0_i32 = arith.constant 0 : i32
    %c0_i32_0 = arith.constant 0 : i32
    %c0_i32_1 = arith.constant 0 : i32
    return %arg0, %c0_i32, %c0_i32_0 : i32, i32, i32
  }
  func.func @transform_16(%arg0: i32) -> (i32, i32, i32) {
    %c0_i32 = arith.constant 0 : i32
    %c0_i32_0 = arith.constant 0 : i32
    %c0_i32_1 = arith.constant 0 : i32
    return %arg0, %c0_i32, %c0_i32_0 : i32, i32, i32
  }
  func.func @transform_17(%arg0: i32) -> (i32, i32, i32) {
    %c0_i32 = arith.constant 0 : i32
    %c0_i32_0 = arith.constant 0 : i32
    %c0_i32_1 = arith.constant 0 : i32
    return %arg0, %c0_i32, %c0_i32_0 : i32, i32, i32
  }
  func.func @transform_18(%arg0: i32) -> (i32, i32, i32) {
    %c0_i32 = arith.constant 0 : i32
    %c0_i32_0 = arith.constant 0 : i32
    %c0_i32_1 = arith.constant 0 : i32
    return %arg0, %c0_i32, %c0_i32_0 : i32, i32, i32
  }
  func.func @transform_19(%arg0: i32) -> (i32, i32, i32) {
    %c0_i32 = arith.constant 0 : i32
    %c0_i32_0 = arith.constant 0 : i32
    %c0_i32_1 = arith.constant 0 : i32
    return %arg0, %c0_i32, %c0_i32_0 : i32, i32, i32
  }
  func.func @transform_20(%arg0: i32) -> (i32, i32, i32) {
    %c0_i32 = arith.constant 0 : i32
    %c0_i32_0 = arith.constant 0 : i32
    %c0_i32_1 = arith.constant 0 : i32
    return %arg0, %c0_i32, %c0_i32_0 : i32, i32, i32
  }
  func.func @transform_21(%arg0: i32) -> (i32, i32, i32) {
    %c0_i32 = arith.constant 0 : i32
    %c0_i32_0 = arith.constant 0 : i32
    %c0_i32_1 = arith.constant 0 : i32
    return %arg0, %c0_i32, %c0_i32_0 : i32, i32, i32
  }
  func.func @transform_22(%arg0: i32) -> (i32, i32, i32) {
    %c0_i32 = arith.constant 0 : i32
    %c0_i32_0 = arith.constant 0 : i32
    %c0_i32_1 = arith.constant 0 : i32
    return %arg0, %c0_i32, %c0_i32_0 : i32, i32, i32
  }
  func.func @transform_23(%arg0: i32) -> (i32, i32, i32) {
    %c0_i32 = arith.constant 0 : i32
    %c0_i32_0 = arith.constant 0 : i32
    %c0_i32_1 = arith.constant 0 : i32
    return %arg0, %c0_i32, %c0_i32_0 : i32, i32, i32
  }
  func.func @transform_24(%arg0: i32) -> (i32, i32, i32) {
    %c0_i32 = arith.constant 0 : i32
    %c0_i32_0 = arith.constant 0 : i32
    %c0_i32_1 = arith.constant 0 : i32
    return %arg0, %c0_i32, %c0_i32_0 : i32, i32, i32
  }
  func.func @transform_25(%arg0: i32) -> (i32, i32, i32) {
    %c0_i32 = arith.constant 0 : i32
    %c0_i32_0 = arith.constant 0 : i32
    %c0_i32_1 = arith.constant 0 : i32
    return %arg0, %c0_i32, %c0_i32_0 : i32, i32, i32
  }
  func.func @transform_26(%arg0: i32) -> (i32, i32, i32) {
    %c0_i32 = arith.constant 0 : i32
    %c0_i32_0 = arith.constant 0 : i32
    %c0_i32_1 = arith.constant 0 : i32
    return %arg0, %c0_i32, %c0_i32_0 : i32, i32, i32
  }
  func.func @transform_27(%arg0: i32) -> (i32, i32, i32) {
    %c0_i32 = arith.constant 0 : i32
    %c0_i32_0 = arith.constant 0 : i32
    %c0_i32_1 = arith.constant 0 : i32
    return %arg0, %c0_i32, %c0_i32_0 : i32, i32, i32
  }
  func.func @transform_28(%arg0: i32) -> (i32, i32, i32) {
    %c0_i32 = arith.constant 0 : i32
    %c0_i32_0 = arith.constant 0 : i32
    %c0_i32_1 = arith.constant 0 : i32
    return %arg0, %c0_i32, %c0_i32_0 : i32, i32, i32
  }
  func.func @transform_29(%arg0: i32) -> (i32, i32, i32) {
    %c0_i32 = arith.constant 0 : i32
    %c0_i32_0 = arith.constant 0 : i32
    %c0_i32_1 = arith.constant 0 : i32
    return %arg0, %c0_i32, %c0_i32_0 : i32, i32, i32
  }
  func.func @transform_30(%arg0: i32) -> (i32, i32, i32) {
    %c0_i32 = arith.constant 0 : i32
    %c0_i32_0 = arith.constant 0 : i32
    %c0_i32_1 = arith.constant 0 : i32
    return %arg0, %c0_i32, %c0_i32_0 : i32, i32, i32
  }
  func.func @transform_31(%arg0: i32) -> (i32, i32) {
    %c0_i32 = arith.constant 0 : i32
    %c0_i32_0 = arith.constant 0 : i32
    %c0_i32_1 = arith.constant 0 : i32
    return %c0_i32, %c0_i32_0 : i32, i32
  }
}

</mosaic_0001>

<bundles_post_ra>
// kernel: tpu_custom_call.1
= control target key start
LH: loop header
LB: loop body
LE: loop exit
PB: predicated region body
PF: predicated region fallthrough
CT: control target
= control target key end

     0   :  { %s4156_s6 = smov 1   ;;  %s4157_s10 = smov 2   ;;  %s4762_s0 = inlined_call_operand.smem [shape: u32[32], index: -1, kind: input, shape index: {}] }
   0x1   :  { %s4206_s5 = sld [smem:[%s4762_s0]]   ;;  %s4158_s14 = smov 3  }
   0x2   :  { %s4211_s9 = sld [smem:[%s4762_s0 + %s4156_s6]]   ;;  %s4159_s18 = smov 4  }
   0x3   :  { %s4216_s13 = sld [smem:[%s4762_s0 + %s4157_s10]]   ;;  %s4160_s22 = smov 5  }
   0x4   :  { %s4221_s17 = sld [smem:[%s4762_s0 + %s4158_s14]]   ;;  %s4161_s26 = smov 6  }
   0x5   :  { %s4226_s21 = sld [smem:[%s4762_s0 + %s4159_s18]]   ;;  %s4162_s30 = smov 7  }
   0x6   :  { %s4231_s25 = sld [smem:[%s4762_s0 + %s4160_s22]]   ;;  %s4163_s4 = smov 8  }
   0x7   :  { %4775 = sst [smem:[#allocation7_spill]] %s4206_s5  ;;  %s4164_s10 = smov 9  }
   0x8   :  { %4776 = sst [smem:[#allocation8_spill]] %s4211_s9  ;;  %s4165_s15 = smov 10  }
   0x9   :  { %4777 = sst [smem:[#allocation9_spill]] %s4216_s13  ;;  %s4166_s20 = smov 11  }
   0xa   :  { %4778 = sst [smem:[#allocation10_spill]] %s4221_s17  ;;  %s4168_s1 = smov 13  }
   0xb   :  { %4779 = sst [smem:[#allocation11_spill]] %s4226_s21  ;;  %s4169_s7 = smov 14  }
   0xc   :  { %4780 = sst [smem:[#allocation12_spill]] %s4231_s25  ;;  %s4171_s22 = smov 16  }
   0xd   :  { %s4236_s29 = sld [smem:[%s4762_s0 + %s4161_s26]]   ;;  %s4167_s26 = smov 12  }
   0xe   :  { %s4241_s3 = sld [smem:[%s4762_s0 + %s4162_s30]]   ;;  %s4172_s28 = smov 17  }
   0xf   :  { %s4246_s8 = sld [smem:[%s4762_s0 + %s4163_s4]]  }
  0x10   :  { %s4251_s14 = sld [smem:[%s4762_s0 + %s4164_s10]]  }
  0x11   :  { %s4256_s19 = sld [smem:[%s4762_s0 + %s4165_s15]]   ;;  %s4170_s15 = smov 15  }
  0x12   :  { %s4261_s24 = sld [smem:[%s4762_s0 + %s4166_s20]]  }
  0x13   :  { %4781 = sst [smem:[#allocation13_spill]] %s4236_s29 }
  0x14   :  { %4782 = sst [smem:[#allocation14_spill]] %s4241_s3 }
  0x15   :  { %4783 = sst [smem:[#allocation15_spill]] %s4246_s8 }
  0x16   :  { %4784 = sst [smem:[#allocation16_spill]] %s4251_s14 }
  0x17   :  { %4785 = sst [smem:[#allocation17_spill]] %s4256_s19 }
  0x18   :  { %4786 = sst [smem:[#allocation18_spill]] %s4261_s24 }
  0x19   :  { %s4266_s30 = sld [smem:[%s4762_s0 + %s4167_s26]]  }
  0x1a   :  { %s4271_s6 = sld [smem:[%s4762_s0 + %s4168_s1]]  }
  0x1b   :  { %s4276_s12 = sld [smem:[%s4762_s0 + %s4169_s7]]   ;;  %s4173_s7 = smov 18  }
  0x1c   :  { %s4281_s20 = sld [smem:[%s4762_s0 + %s4170_s15]]   ;;  %s4174_s15 = smov 19  }
  0x1d   :  { %s4286_s27 = sld [smem:[%s4762_s0 + %s4171_s22]]   ;;  %s4175_s22 = smov 20  }
  0x1e   :  { %s4291_s4 = sld [smem:[%s4762_s0 + %s4172_s28]]   ;;  %s4176_s28 = smov 21  }
  0x1f   :  { %4787 = sst [smem:[#allocation19_spill]] %s4266_s30 }
  0x20   :  { %4788 = sst [smem:[#allocation20_spill]] %s4271_s6 }
  0x21   :  { %4789 = sst [smem:[#allocation21_spill]] %s4276_s12 }
  0x22   :  { %4790 = sst [smem:[#allocation22_spill]] %s4281_s20 }
  0x23   :  { %4791 = sst [smem:[#allocation23_spill]] %s4286_s27 }
  0x24   :  { %4792 = sst [smem:[#allocation24_spill]] %s4291_s4 }
  0x25   :  { %s4296_s9 = sld [smem:[%s4762_s0 + %s4173_s7]]   ;;  %s4177_s7 = smov 22  }
  0x26   :  { %s4301_s21 = sld [smem:[%s4762_s0 + %s4174_s15]]   ;;  %s4178_s15 = smov 23  }
  0x27   :  { %s4306_s17 = sld [smem:[%s4762_s0 + %s4175_s22]]   ;;  %s4179_s22 = smov 24  }
  0x28   :  { %s4311_s13 = sld [smem:[%s4762_s0 + %s4176_s28]]   ;;  %s4180_s28 = smov 25  }
  0x29   :  { %s4316_s5 = sld [smem:[%s4762_s0 + %s4177_s7]]   ;;  %s4181_s7 = smov 26  }
  0x2c   :  { %4793 = sst [smem:[#allocation25_spill]] %s4301_s21 }
  0x2d   :  { %4794 = sst [smem:[#allocation26_spill]] %s4306_s17 }
  0x2e   :  { %4795 = sst [smem:[#allocation27_spill]] %s4311_s13 }
  0x2f   :  { %4796 = sst [smem:[#allocation28_spill]] %s4316_s5 }
  0x30   :  { %s4321_s21 = sld [smem:[%s4762_s0 + %s4178_s15]]   ;;  %s4182_s15 = smov 27  }
  0x31   :  { %s4326_s17 = sld [smem:[%s4762_s0 + %s4179_s22]]   ;;  %s4183_s22 = smov 28  }
  0x32   :  { %s4331_s13 = sld [smem:[%s4762_s0 + %s4180_s28]]   ;;  %s4184_s28 = smov 29  }
  0x33   :  { %s4336_s5 = sld [smem:[%s4762_s0 + %s4181_s7]]   ;;  %s4185_s7 = smov 30  }
  0x36   :  { %4797 = sst [smem:[#allocation29_spill]] %s4321_s21 }
  0x37   :  { %4798 = sst [smem:[#allocation30_spill]] %s4326_s17 }
  0x38   :  { %4799 = sst [smem:[#allocation31_spill]] %s4331_s13 }
  0x39   :  { %4800 = sst [smem:[#allocation32_spill]] %s4336_s5 }
  0x3a   :  { %s4341_s21 = sld [smem:[%s4762_s0 + %s4182_s15]]   ;;  %s4186_s15 = smov 31  }
  0x3b   :  { %s4346_s17 = sld [smem:[%s4762_s0 + %s4183_s22]]  }
  0x3c   :  { %s4351_s13 = sld [smem:[%s4762_s0 + %s4184_s28]]  }
  0x3d   :  { %s4356_s5 = sld [smem:[%s4762_s0 + %s4185_s7]]  }
  0x40   :  { %4801 = sst [smem:[#allocation33_spill]] %s4341_s21 }
  0x41   :  { %s4361_s21 = sld [smem:[%s4762_s0 + %s4186_s15]]  }
  0x42   :  { %4802 = sst [smem:[#allocation34_spill]] %s4351_s13 }
  0x43   :  { %4803 = sst [smem:[#allocation35_spill]] %s4356_s5 }
  0x47   :  { %4804 = sst [smem:[#allocation36_spill]] %s4361_s21 }
  0x48   :  { %68 = vsyncpa [#allocation5], 0  ;;  %s4363_s22 = smov 0  }
  0x49 LB: > { %4805 = sst [smem:[#allocation37_spill]] %s4154_s22  ;;  %s4369_s23 = sadd.s32 4294967295, %s4154_s22   ;;  %s4154_s22 = sphi %s4363_s22, %s74_s22  }
  0x4a   : > { %4806 = sst [smem:[#allocation38_spill]] %s4369_s23  ;;  %p3600_p0 = scmp.ge.s32.totalorder %s4154_s22, 1 }
  0x4b   : > { %p1083_p1 = scmp.lt.s32.totalorder %s4154_s22, 3 }
  0x4d   : > { %p1084_p2 = pnand %p3600_p0, %p1083_p1 }
  0x4f   : > { %1087 = sbr.rel (%p1084_p2) target bundleno = 4422 (0x1146), region = 144 }
  0x56   : > { %s4808_s25 = sld [smem:[#allocation12_spill]]  ;;  %s4809_s3 = sld [smem:[#allocation14_spill]] }
  0x57   : > { %s4811_s14 = sld [smem:[#allocation16_spill]]  ;;  %s4813_s24 = sld [smem:[#allocation18_spill]] }
  0x58   : > { %s4817_s20 = sld [smem:[#allocation22_spill]]  ;;  %p1251_p3 = scmp.lt.s32.totalorder %s4369_s23, 1 }
  0x59   : > { %s4819_s4 = sld [smem:[#allocation24_spill]]  ;;  %s4820_s28 = sld [smem:[#allocation25_spill]] }
  0x5a   : > { %s4375_s0 = scalar_select %p1251_p3, %s4369_s23, 1 }
  0x5b   : > { %s4821_s2 = sld [smem:[#allocation26_spill]]  ;;  %s4823_s10 = sld [smem:[#allocation27_spill]] }
  0x5c   : > { %s3694_s26 = sshll.u32 %s4375_s0, 4  ;;  %s4825_s15 = sld [smem:[#allocation28_spill]] }
  0x5d   : > { %s4381_s7 = scalar_lea.vmem %s4808_s25, %s3694_s26  ;;  %s4384_s11 = scalar_lea.vmem %s4809_s3, %s3694_s26 }
  0x5e   : > { %4822 = sst [smem:[#allocation39_spill]] %s4381_s7  ;;  %s4826_s18 = sld [smem:[#allocation29_spill]] }
  0x5f   : > { %4824 = sst [smem:[#allocation40_spill]] %s4384_s11  ;;  %s4389_s22 = scalar_lea.vmem %s4811_s14, %s3694_s26 }
  0x60   : > { %4827 = sst [smem:[#allocation41_spill]] %s4389_s22  ;;  %s4828_s21 = sld [smem:[#allocation30_spill]] }
  0x61   : > { %s4829_s5 = sld [smem:[#allocation31_spill]]  ;;  %s3697_s13 = sshll.u32 %s4375_s0, 3 }
  0x62   : > { %s4830_s1 = sld [smem:[#allocation32_spill]]  ;;  %s4395_s29 = scalar_lea.vmem %s4813_s24, %s3697_s13 }
  0x63   : > { %4831 = sst [smem:[#allocation42_spill]] %s4395_s29  ;;  %s4832_s7 = sld [smem:[#allocation33_spill]] }
  0x64   : > { %s4833_s8 = sld [smem:[#allocation34_spill]]  ;;  %s4404_s14 = scalar_lea.vmem %s4817_s20, %s3694_s26 }
  0x65   : > { %4834 = sst [smem:[#allocation43_spill]] %s4404_s14  ;;  %s4409_s19 = scalar_lea.vmem %s4819_s4, %s3694_s26 }
  0x66   : > { %s4835_s22 = sld [smem:[#allocation35_spill]]  ;;  %4836 = sst [smem:[#allocation44_spill]] %s4409_s19 }
  0x67   : > { %s1304_s11 = scalar_lea.vmem %s4296_s9, %s4375_s0  ;;  %s4414_s24 = scalar_lea.vmem %s4820_s28, %s3694_s26 }
  0x68   : > { %s1312_s29 = scalar_lea.vmem %s4821_s2, %s4375_s0  ;;  %s4419_s25 = scalar_lea.vmem %s4823_s10, %s3697_s13 }
  0x69   : > { %s1320_s30 = scalar_lea.vmem %s4825_s15, %s4375_s0  ;;  %s1323_s3 = scalar_lea.vmem %s4826_s18, %s4375_s0 }
  0x6a   : > { %s1326_s6 = scalar_lea.vmem %s4828_s21, %s4375_s0  ;;  %s4428_s12 = scalar_lea.vmem %s4829_s5, %s3694_s26 }
  0x6b   : > { %s1334_s16 = scalar_lea.vmem %s4830_s1, %s4375_s0  ;;  %s3703_s20 = sshll.u32 %s4375_s0, 5 }
  0x6c   : > { %s1342_s14 = scalar_lea.vmem %s4346_s17, %s4375_s0  ;;  %s4436_s23 = scalar_lea.vmem %s4832_s7, %s3703_s20 }
  0x6d   : > { %s1345_s27 = scalar_lea.vmem %s4833_s8, %s4375_s0  ;;  %s1348_s4 = scalar_lea.vmem %s4835_s22, %s4375_s0 }
  0x6e   : > { %s4837_s19 = sld [smem:[#allocation38_spill]] }
  0x74   : > { %p3621_p4 = scmp.ne.s32.totalorder %s4837_s19, 0 }
  0x75   : > { %s4838_s28 = sld [smem:[#allocation7_spill]] (!%p3621_p4)  ;;  %s4839_s2 = sld [smem:[#allocation9_spill]] (!%p3621_p4)  ;;  %vm1356_vm0 = vcmask (!%p3621_p4), 261120   ;;  %v1359_v2 = vlaneseq (!%p3621_p4)  ;;  %v4187_v4 = vmov (!%p3621_p4), 1966171168   ;;  %vm1416_vm1 = vcmask (!%p3621_p4), 123904  }
  0x76   : > { %1353 = sbr.rel (%p3621_p4) target bundleno = 137 (0x89), region = 148  ;;  %s4840_s13 = sld [smem:[#allocation10_spill]] (!%p3621_p4)  ;;  %v1375_v5 = vunpack.c.l.s4 (!%p3621_p4), %v4187_v4  ;;  %v4188_v10 = vmov (!%p3621_p4), 0.0   ;;  %v4189_v17 = vmov (!%p3621_p4), 0   ;;  %vm1410_vm7 = vcmask (!%p3621_p4), 64512  }
  0x77   : > { %v1360_v6 = vshrl.u32 (!%p3621_p4), %v1359_v2, 7  ;;  %v1362_v13 = vand.u32 (!%p3621_p4), 127, %v1359_v2 }
  0x78   : > { %v1376_v8 = vunpack.c.0.s8 (!%p3621_p4), %v1375_v5 }
  0x79   : > { %v1398_v15 = vsub.s32 (!%p3621_p4), 0, %v1360_v6  ;;  %vm1363_vm5 = vcmp.gt.s32.totalorder (!%p3621_p4), %v1362_v13, %v1360_v6 }
  0x7a   : > { %v1379_v12 = vsub.s32 (!%p3621_p4), %v1376_v8, %v1360_v6 }
  0x7b   : > { %v1354_v0 = vld [vmem:[%s4838_s28] sm:$0xff] (!%p3621_p4)  ;;  %v1355_v1 = vld [vmem:[%s4838_s28 + $0x8] sm:$0xff] (!%p3621_p4) }
  0x7c   : > { %1357 = vst.msk [vmem:[#allocation4] sm:$0xff] (!%p3621_p4), %vm1356_vm0, %v1354_v0  ;;  %1358 = vst.msk [vmem:[#allocation4 + $0x8] sm:$0xff] (!%p3621_p4), %vm1356_vm0, %v1355_v1  ;;  %v3622_v3 = vld.sshfl [vmem:[%s4839_s2] sm:$0x11 pattern:$0x75316420] (!%p3621_p4) }
  0x7d   : > { %v1413_v7 = vld [vmem:[%s4840_s13] sm:$0x3]  ;;  %v1373_v9 = vcombine.high %v3622_v3, %v3622_v3  ;;  %v1380_v14 = vrot.slane %v3622_v3, %v1379_v12 }
  0x7e   : > { %vm1414_vm2 = vcmp.gt.f32.partialorder %v1413_v7, 0.5 }
  0x7f   : > { %v1415_v11 = vsel %vm1414_vm2, -1e+30, %v4188_v10  ;;  %v1387_v16 = vrot.slane %v1373_v9, %v1379_v12  ;;  %vm1390_vm3 = vcmp.gt.f32.partialorder %v1380_v14, 0.5 }
  0x80   : > { %1417 = vst.msk [vmem:[#allocation3] sm:$0x3] %vm1416_vm1, %v1415_v11  ;;  %v1394_v18 = vsel %vm1390_vm3, 1, %v4189_v17 }
  0x81   : > { %vm1391_vm4 = vcmp.gt.f32.partialorder %v1387_v16, 0.5  ;;  %v1399_v20 = vrot.slane %v1394_v18, %v1398_v15 }
  0x82   : > { %v1395_v19 = vsel %vm1391_vm4, 1, %v4189_v17 }
  0x83   : > { %v1403_v21 = vrot.slane %v1395_v19, %v1398_v15  ;;  %vm1404_vm6 = vcmp.eq.s32.totalorder %v1399_v20, 1 }
  0x84   : > { %vm1406_vm9 = vmor %vm1363_vm5, %vm1404_vm6 }
  0x85   : > { %vm1405_vm8 = vcmp.eq.s32.totalorder %v1403_v21, 1  ;;  %v1408_v22 = vsel %vm1406_vm9, -1e+30, %v4188_v10 }
  0x86   : > { %vm1407_vm10 = vmor %vm1363_vm5, %vm1405_vm8  ;;  %1411 = vst.msk [vmem:[#allocation2] sm:$0xff] %vm1410_vm7, %v1408_v22 }
  0x87   : > { %v1409_v23 = vsel %vm1407_vm10, -1e+30, %v4188_v10 }
  0x88   : > { %1412 = vst.msk [vmem:[#allocation2 + $0x8] sm:$0xff] %vm1410_vm7, %v1409_v23 }
  0x89 PF: > { %s4841_s5 = sld [smem:[#allocation40_spill]]  ;;  %s4842_s21 = sld [smem:[#allocation39_spill]]  ;;  %v4190_v25 = vmov 0.0   ;;  %vm4191_vm11 = vmmov 0   ;;  %vm1486_vm12 = vcmask 261120   ;;  %vm1695_vm13 = vcmask 64512  }
  0x8a   : > { %3776 = vmatprep.subr.bf16.mxu1 %v4190_v25  ;;  %3768 = vmatprep.subr.bf16.mxu0 %v4190_v25  ;;  %s4843_s8 = sld [smem:[#allocation41_spill]]  ;;  %s4844_s19 = sld [smem:[#allocation15_spill]]  ;;  %vm1939_vm14 = vcmask 1043456   ;;  %vm2147_vm15 = vcmask 130048   ;;  %vm3171_vm0 = vcmask 523264  }
  0x8b   : > { %3780 = vmatprep.mubr.msk.bf16.mxu1 %vm4191_vm11, %v4190_v25  ;;  %3772 = vmatprep.mubr.msk.bf16.mxu0 %vm4191_vm11, %v4190_v25  ;;  %s4845_s20 = sld [smem:[#allocation13_spill]]  ;;  %s4848_s1 = sld [smem:[#allocation17_spill]] }
  0x8c   : > { %s4192_s7 = smov 120   ;;  %s4850_s15 = sld [smem:[#allocation42_spill]] }
  0x8d   : > { %v1426_v17 = vld [vmem:[#allocation2] sm:$0xff]  ;;  %s4851_s18 = sld [smem:[#allocation19_spill]]  ;;  %s4193_s2 = smov 8  }
  0x8f   : > { %v4052_v24 = vld [vmem:[%s4841_s5] sm:$0xff]   ;;  %v4053_v26 = vld [vmem:[%s4841_s5 + $0x8] sm:$0xff]   ;;  %v4455_v28 = vld [vmem:[#allocation4] sm:$0xff]  ;;  %s4853_s5 = sld [smem:[#allocation11_spill]] }
  0x90   : > { %3777 = vmatpush3.bf16.msra.mxu1 %v4052_v24  ;;  %v4054_v27 = vld [vmem:[%s4842_s21] sm:$0xff]   ;;  %v4055_v30 = vld [vmem:[%s4842_s21 + $0x8] sm:$0xff]   ;;  %s4846_s22 = scalar_lea.vmem %s4844_s19, %s4375_s0  ;;  %s4854_s21 = sld [smem:[#allocation44_spill]] }
  0x91   : > { %3778 = vmatprep.subr.bf16.mxu1 %v4190_v25  ;;  %v4457_v29 = vld [vmem:[#allocation4 + $0x8] sm:$0xff]  ;;  %3769 = vmatpush3.bf16.msra.mxu0 %v4054_v27  ;;  %v4057_v33 = vld [vmem:[%s4843_s8 + $0x8] sm:$0xff]   ;;  %s4847_s26 = scalar_lea.vmem %s4845_s20, %s4375_s0  ;;  %s4849_s10 = scalar_lea.vmem %s4848_s1, %s4375_s0 }
  0x92   : > { %v1462_v31 = vpack.c.bf16 %v4457_v29, %v4455_v28  ;;  %3770 = vmatprep.subr.bf16.mxu0 %v4190_v25  ;;  %v4056_v32 = vld [vmem:[%s4843_s8] sm:$0xff]   ;;  %v1427_v22 = vld [vmem:[#allocation2 + $0x8] sm:$0xff]  ;;  %s4855_s8 = sld [smem:[#allocation8_spill]]  ;;  %s4856_s19 = sld [smem:[#allocation43_spill]] }
  0x93   : > { %v3628_v34 = vld [vmem:[%s4846_s22] ss:$0 sm:$0xff]  ;;  %s4852_s13 = scalar_lea.vmem %s4851_s18, %s4375_s0  ;;  %s4857_s20 = sld [smem:[#allocation20_spill]] }
  0x94   : > { %3779 = vmatpush3.bf16.msra.mxu1 %v4053_v26  ;;  %v3624_v38 = vld [vmem:[%s4847_s26] ss:$0 sm:$0xff]  ;;  %s4858_s22 = sld [smem:[#allocation21_spill]] }
  0x95   : > { %3792 = vmatprep.subr.bf16.mxu1 %v4190_v25  ;;  %3771 = vmatpush3.bf16.msra.mxu0 %v4055_v30  ;;  %v3632_v54 = vld [vmem:[%s4849_s10] ss:$0 sm:$0xff] }
  0x96   : > { %3784 = vmatprep.subr.bf16.mxu0 %v4190_v25 }
  0x97   : > { %3781 = vmatmul.mubr.msk.bf16.vlgmr.msra.gmra.mrb[0].mxu1 %vm1486_vm12, %v1462_v31 }
  0x98   : > { %3794 = vmatprep.mubr.msk.bf16.mxu1 %vm4191_vm11, %v4190_v25  ;;  %3773 = vmatmul.mubr.msk.bf16.vlgmr.msra.gmra.mrb[0].mxu0 %vm1486_vm12, %v1462_v31 }
  0x99   : > { %3785 = vmatpush3.bf16.msra.mxu0 %v4056_v32  ;;  %3788 = vmatprep.mubr.msk.bf16.mxu0 %vm4191_vm11, %v4190_v25  ;;  %s4859_s26 = scalar_lea.vmem %s4857_s20, %s4375_s0 }
  0x9a   : > { %3786 = vmatprep.subr.bf16.mxu0 %v4190_v25  ;;  %s4860_s1 = scalar_lea.vmem %s4858_s22, %s4375_s0 }
  0x9d   : > { %3787 = vmatpush3.bf16.msra.mxu0 %v4057_v33 }
  0x9e   : > { %3798 = vmatprep.subr.bf16.mxu0 %v4190_v25 }
  0xa0   : > { %3789 = vmatmul.mubr.msk.bf16.vlgmr.msra.gmra.mrb[4].mxu0 %vm1486_vm12, %v1462_v31 }
  0xa1   : > { %3800 = vmatprep.mubr.msk.bf16.mxu0 %vm4191_vm11, %v4190_v25 }
 0x16a   : > { %v1588_v35 = vpop.f32.mrb[0].mxu1 }
 0x16b   : > { %v1589_v36 = vadd.f32 %v3628_v34, %v1588_v35  ;;  %v3782_v37 = vpop.f32.mrb[1].mxu1  ;;  %v1524_v40 = vpop.f32.mrb[0].mxu0 }
 0x16c   : > { %v1591_v39 = vpop.f32.mrb[2].mxu1  ;;  %v3774_v44 = vpop.f32.mrb[1].mxu0  ;;  %v1525_v45 = vadd.f32 %v3624_v38, %v1524_v40 }
 0x16d   : > { %v1679_v41 = vpack.c.bf16 %v1589_v36, %v1589_v36  ;;  %v1592_v42 = vadd.f32 %v3628_v34, %v1591_v39  ;;  %v3783_v43 = vpop.f32.mrb[3].mxu1  ;;  %v1527_v46 = vpop.f32.mrb[2].mxu0 }
 0x16e   : > { %v3775_v50 = vpop.f32.mrb[3].mxu0  ;;  %v1528_v51 = vadd.f32 %v3624_v38, %v1527_v46  ;;  %v1667_v55 = vpack.c.bf16 %v1525_v45, %v1525_v45 }
 0x16f   : > { %v1680_v47 = vpack.c.bf16 %v1592_v42, %v1592_v42  ;;  %v1700_v48 = vsel %vm1695_vm13, %v1679_v41, 0  ;;  %v4000_v49 = vpack.i.bf16 %v1592_v42, %v1589_v36 }
 0x170   : > { %3793 = vmatpush3.bf16.xpose.msra.mxu1 %v1700_v48  ;;  %v4005_v53 = vpack.i.bf16 %v1528_v51, %v1525_v45  ;;  %v1668_v60 = vpack.c.bf16 %v1528_v51, %v1528_v51 }
 0x171   : > { %4001 = vrot.lane.b32.xlu0 %v4000_v49, %s4192_s7  ;;  %v1746_v52 = vsel %vm1695_vm13, %v1680_v47, 0  ;;  %3804 = vmatprep.subr.bf16.mxu1 %v4190_v25 }
 0x172   : > { %3799 = vmatpush3.bf16.xpose.msra.mxu0 %v1746_v52 }
 0x173   : > { %3810 = vmatprep.subr.bf16.mxu0 %v4190_v25  ;;  %v1652_v56 = vpop.f32.mrb[4].mxu0 }
 0x174   : > { %v4495_v57 = vadd.f32 %v3632_v54, %v1652_v56  ;;  %v3790_v58 = vpop.f32.mrb[5].mxu0 }
 0x175   : > { %4006 = vrot.lane.b32.xlu0 %v4005_v53, %s4192_s7  ;;  %v1655_v59 = vpop.f32.mrb[6].mxu0 }
 0x176   : > { %v4498_v61 = vadd.f32 %v3632_v54, %v1655_v59  ;;  %v3791_v62 = vpop.f32.mrb[7].mxu0  ;;  %v1691_v10 = vpack.c.bf16 %v4495_v57, %v4495_v57 }
 0x177   : > { %3795 = vmatmul.mubr.msk.bf16.vlgmr.msra.gmra.mrb[4].mxu1 %vm1695_vm13, %v1667_v55 }
 0x178   : > { %3806 = vmatprep.mubr.msk.bf16.mxu1 %vm4191_vm11, %v4190_v25  ;;  %v4010_v63 = vpack.i.bf16 %v4498_v61, %v4495_v57  ;;  %v1692_v11 = vpack.c.bf16 %v4498_v61, %v4498_v61  ;;  %v1941_v14 = vsel %vm1939_vm14, %v1691_v10, 0 }
 0x179   : > { %3801 = vmatmul.mubr.msk.bf16.vlgmr.msra.gmra.mrb[8].mxu0 %vm1695_vm13, %v1668_v60 }
 0x17a   : > { %3812 = vmatprep.mubr.msk.bf16.mxu0 %vm4191_vm11, %v4190_v25  ;;  %v1987_v15 = vsel %vm1939_vm14, %v1692_v11, 0 }
 0x1e3   : > { %v4002_v0 = vpop.permute.xlu0 %4001 }
 0x1e4   : > { %v4004_v1 = vunpack.i.h.bf16 %v4002_v0  ;;  %v4003_v2 = vunpack.i.l.bf16 %v4002_v0 }
 0x1e6   : > { %v1682_v3 = vpack.c.bf16 %v4004_v1, %v4004_v1  ;;  %v1681_v4 = vpack.c.bf16 %v4003_v2, %v4003_v2 }
 0x1e7   : > { %v4007_v5 = vpop.permute.xlu0 %4006 }
 0x1e8   : > { %v1792_v6 = vsel %vm1695_vm13, %v1681_v4, 0  ;;  %v1838_v7 = vsel %vm1695_vm13, %v1682_v3, 0  ;;  %v4009_v8 = vunpack.i.h.bf16 %v4007_v5  ;;  %v4008_v9 = vunpack.i.l.bf16 %v4007_v5 }
 0x1e9   : > { %3805 = vmatpush3.bf16.xpose.msra.mxu1 %v1792_v6  ;;  %3811 = vmatpush3.bf16.xpose.msra.mxu0 %v1838_v7 }
 0x1ea   : > { %3816 = vmatprep.subr.bf16.mxu1 %v4190_v25  ;;  %3822 = vmatprep.subr.bf16.mxu0 %v4190_v25  ;;  %v1670_v12 = vpack.c.bf16 %v4009_v8, %v4009_v8  ;;  %v1669_v13 = vpack.c.bf16 %v4008_v9, %v4008_v9 }
 0x1f0   : > { %3807 = vmatmul.mubr.msk.bf16.vlgmr.msra.gmra.mrb[8].mxu1 %vm1695_vm13, %v1669_v13  ;;  %3813 = vmatmul.mubr.msk.bf16.vlgmr.msra.gmra.mrb[12].mxu0 %vm1695_vm13, %v1670_v12 }
 0x1f1   : > { %3817 = vmatpush3.bf16.msra.mxu1 %v1941_v14  ;;  %3823 = vmatpush3.bf16.msra.mxu0 %v1987_v15 }
 0x1f2   : > { %3818 = vmatprep.mubr.msk.bf16.mxu1 %vm4191_vm11, %v4190_v25  ;;  %3824 = vmatprep.mubr.msk.bf16.mxu0 %vm4191_vm11, %v4190_v25 }
 0x1f3   : > { %3828 = vmatprep.subr.bf16.mxu1 %v4190_v25  ;;  %3834 = vmatprep.subr.bf16.mxu0 %v4190_v25 }
 0x24a   : > { %v1736_v16 = vpop.f32.mrb[4].mxu1 }
 0x24b   : > { %v1880_v18 = vmul.f32 0.35355338, %v1736_v16  ;;  %v3796_v19 = vpop.f32.mrb[5].mxu1 }
 0x24c   : > { %v1739_v20 = vpop.f32.mrb[6].mxu1  ;;  %v1782_v21 = vpop.f32.mrb[8].mxu0 }
 0x24d   : > { %v1881_v23 = vmul.f32 0.35355338, %v1782_v21  ;;  %v3797_v24 = vpop.f32.mrb[7].mxu1  ;;  %v3802_v26 = vpop.f32.mrb[9].mxu0  ;;  %v1884_v27 = vadd.f32 %v1880_v18, %v1426_v17 }
 0x24e   : > { %v1785_v30 = vpop.f32.mrb[10].mxu0 }
 0x24f   : > { %v3803_v31 = vpop.f32.mrb[11].mxu0  ;;  %v1888_v32 = vsel %vm1695_vm13, %v1884_v27, -inf  ;;  %v1885_v33 = vadd.f32 %v1881_v23, %v1427_v22 }
 0x250   : > { %1889 = vmax.xlane.f32.xlu1 %v1888_v32  ;;  %v4058_v32 = vld [vmem:[%s4850_s15] sm:$0xff]  }
 0x251   : > { %v1891_v34 = vsel %vm1695_vm13, %v1885_v33, -inf }
 0x254   : > { %1892 = vmax.xlane.f32.xlu1 %v1891_v34 }
 0x2c3   : > { %v1828_v35 = vpop.f32.mrb[8].mxu1  ;;  %v1874_v36 = vpop.f32.mrb[12].mxu0 }
 0x2c4   : > { %v1882_v37 = vmul.f32 0.35355338, %v1828_v35  ;;  %v1883_v38 = vmul.f32 0.35355338, %v1874_v36  ;;  %v3808_v39 = vpop.f32.mrb[9].mxu1  ;;  %v3814_v40 = vpop.f32.mrb[13].mxu0 }
 0x2c5   : > { %v1831_v41 = vpop.f32.mrb[10].mxu1  ;;  %v1877_v42 = vpop.f32.mrb[14].mxu0 }
 0x2c6   : > { %v3809_v43 = vpop.f32.mrb[11].mxu1  ;;  %v3815_v44 = vpop.f32.mrb[15].mxu0  ;;  %v1886_v45 = vadd.f32 %v1882_v37, %v1426_v17  ;;  %v1887_v46 = vadd.f32 %v1883_v38, %v1427_v22 }
 0x2c8   : > { %v1894_v47 = vsel %vm1695_vm13, %v1886_v45, -inf  ;;  %v1897_v48 = vsel %vm1695_vm13, %v1887_v46, -inf }
 0x2c9   : > { %1895 = vmax.xlane.f32.xlu0 %v1894_v47  ;;  %1898 = vmax.xlane.f32.xlu1 %v1897_v48 }
 0x2dd   : > { %v1890_v49 = vpop.xlane.xlu1 %1889 }
 0x2de   : > { %v1900_v50 = vsub.f32 %v1884_v27, %v1890_v49 }
 0x2e0   : > { %v1904_v51 = vmul.f32 1.442695, %v1900_v50 }
 0x2e1   : > { %v1893_v52 = vpop.xlane.xlu1 %1892 }
 0x2e2   : > { %4074 = vpow2.f32 %v1904_v51  ;;  %v1901_v53 = vsub.f32 %v1885_v33, %v1893_v52 }
 0x2e4   : > { %v1906_v54 = vmul.f32 1.442695, %v1901_v53 }
 0x2e6   : > { %4076 = vpow2.f32 %v1906_v54 }
 0x2ec   : > { %v4075_v55 = vpop.eup %4074 }
 0x2ed   : > { %v1912_v56 = vsel %vm1695_vm13, %v4075_v55, 0.0 }
 0x2ee   : > { %1913 = vadd.xlane.f32.xlu1 %v1912_v56 }
 0x2f0   : > { %v4077_v58 = vpop.eup %4076 }
 0x2f1   : > { %v1915_v59 = vsel %vm1695_vm13, %v4077_v58, 0.0 }
 0x2f2   : > { %1916 = vadd.xlane.f32.xlu1 %v1915_v59 }
 0x356   : > { %v1896_v60 = vpop.xlane.xlu0 %1895  ;;  %v1899_v62 = vpop.xlane.xlu1 %1898 }
 0x357   : > { %v1902_v0 = vsub.f32 %v1886_v45, %v1896_v60  ;;  %v1903_v1 = vsub.f32 %v1887_v46, %v1899_v62 }
 0x359   : > { %v1908_v2 = vmul.f32 1.442695, %v1902_v0  ;;  %v1910_v3 = vmul.f32 1.442695, %v1903_v1 }
 0x35b   : > { %4078 = vpow2.f32 %v1908_v2 }
 0x35c   : > { %4080 = vpow2.f32 %v1910_v3 }
 0x365   : > { %v4079_v4 = vpop.eup %4078 }
 0x366   : > { %v1918_v5 = vsel %vm1695_vm13, %v4079_v4, 0.0  ;;  %v4081_v6 = vpop.eup %4080 }
 0x367   : > { %1919 = vadd.xlane.f32.xlu1 %v1918_v5  ;;  %v1921_v7 = vsel %vm1695_vm13, %v4081_v6, 0.0  ;;  %v4194_v5 = vmov 0  }
 0x368   : > { %4020 = vset.pattern.permute.xlu1 %v4194_v5  ;;  %4021 = vset.pattern.permute.xlu0 %v4194_v5 }
 0x36b   : > { %1922 = vadd.xlane.f32.xlu1 %v1921_v7 }
 0x37b   : > { %v1914_v8 = vpop.xlane.xlu1 %1913 }
 0x37c   : > { %4082 = vrcp.f32 %v1914_v8  ;;  %4011 = vrot.lane.b32.xlu1 %v4010_v63, %s4192_s7 }
 0x37f   : > { %v1917_v9 = vpop.xlane.xlu1 %1916 }
 0x380   : > { %4084 = vrcp.f32 %v1917_v9 }
 0x386   : > { %v4083_v10 = vpop.eup %4082 }
 0x387   : > { %v1928_v11 = vmul.f32 %v4083_v10, %v4075_v55  ;;  %v3644_v55 = vld [vmem:[%s4852_s13] ss:$0 sm:$0xff] }
 0x389   : > { %v1932_v12 = vpack.c.bf16 %v1928_v11, %v1928_v11 }
 0x38a   : > { %v4085_v13 = vpop.eup %4084 }
 0x38b   : > { %v1929_v14 = vmul.f32 %v4085_v13, %v4077_v58  ;;  %3819 = vmatmul.mubr.msk.bf16.vlgmr.msra.gmra.mrb[12].mxu1 %vm1695_vm13, %v1932_v12 }
 0x38c   : > { %3830 = vmatprep.mubr.msk.bf16.mxu1 %vm4191_vm11, %v4190_v25 }
 0x38d   : > { %v1933_v15 = vpack.c.bf16 %v1929_v14, %v1929_v14 }
 0x38f   : > { %3825 = vmatmul.mubr.msk.bf16.vlgmr.msra.gmra.mrb[16].mxu0 %vm1695_vm13, %v1933_v15  ;;  %v1424_v15 = vld [vmem:[%s4853_s5] sm:$0xff] }
 0x390   : > { %3836 = vmatprep.mubr.msk.bf16.mxu0 %vm4191_vm11, %v4190_v25 }
 0x3f4   : > { %v1920_v57 = vpop.xlane.xlu1 %1919 }
 0x3f5   : > { %4086 = vrcp.f32 %v1920_v57  ;;  %v4059_v57 = vld [vmem:[%s4854_s21] sm:$0xff]  }
 0x3f8   : > { %v1923_v61 = vpop.xlane.xlu1 %1922 }
 0x3f9   : > { %4088 = vrcp.f32 %v1923_v61  ;;  %v4060_v61 = vld [vmem:[%s4854_s21 + $0x8] sm:$0xff]  }
 0x3fc   : > { %v4012_v63 = vpop.permute.xlu1 %4011 }
 0x3fd   : > { %v4014_v16 = vunpack.i.h.bf16 %v4012_v63  ;;  %v4013_v17 = vunpack.i.l.bf16 %v4012_v63  ;;  %v4061_v63 = vld [vmem:[%s4855_s8] sm:$0xff]  }
 0x3ff   : > { %v4087_v18 = vpop.eup %4086  ;;  %v1694_v19 = vpack.c.bf16 %v4014_v16, %v4014_v16  ;;  %v1693_v20 = vpack.c.bf16 %v4013_v17, %v4013_v17  ;;  %v4062_v16 = vld [vmem:[%s4855_s8 + $0x8] sm:$0xff]   ;;  %v4063_v17 = vld [vmem:[%s4856_s19] sm:$0xff]  }
 0x400   : > { %v1930_v21 = vmul.f32 %v4087_v18, %v4079_v4  ;;  %v4064_v18 = vld [vmem:[%s4856_s19 + $0x8] sm:$0xff]  }
 0x401   : > { %v2033_v22 = vsel %vm1939_vm14, %v1693_v20, 0  ;;  %v2079_v23 = vsel %vm1939_vm14, %v1694_v19, 0  ;;  %v4065_v19 = vld [vmem:[%s4414_s24] sm:$0xff]  }
 0x402   : > { %3829 = vmatpush3.bf16.msra.mxu1 %v2033_v22  ;;  %3835 = vmatpush3.bf16.msra.mxu0 %v2079_v23  ;;  %v1934_v24 = vpack.c.bf16 %v1930_v21, %v1930_v21 }
 0x403   : > { %v4089_v26 = vpop.eup %4088  ;;  %3840 = vmatprep.subr.bf16.mxu1 %v4190_v25  ;;  %3846 = vmatprep.subr.bf16.mxu0 %v4190_v25 }
 0x404   : > { %v1931_v27 = vmul.f32 %v4089_v26, %v4081_v6  ;;  %v1425_v6 = vld [vmem:[%s4853_s5 + $0x8] sm:$0xff] }
 0x405   : > { %3831 = vmatmul.mubr.msk.bf16.vlgmr.msra.gmra.mrb[16].mxu1 %vm1695_vm13, %v1934_v24 }
 0x406   : > { %v1935_v30 = vpack.c.bf16 %v1931_v27, %v1931_v27  ;;  %3842 = vmatprep.mubr.msk.bf16.mxu1 %vm4191_vm11, %v4190_v25  ;;  %3841 = vmatpush3.bf16.msra.mxu1 %v4058_v32 }
 0x407   : > { %3854 = vmatprep.subr.bf16.mxu1 %v4059_v57 }
 0x408   : > { %3837 = vmatmul.mubr.msk.bf16.vlgmr.msra.gmra.mrb[20].mxu0 %vm1695_vm13, %v1935_v30  ;;  %v3647_v30 = vld [vmem:[%s4859_s26] ss:$0 sm:$0xff] }
 0x409   : > { %3850 = vmatprep.mubr.msk.bf16.mxu0 %vm4191_vm11, %v4190_v25  ;;  %3847 = vmatpush3.bf16.msra.mxu0 %v4063_v17 }
 0x40a   : > { %3848 = vmatprep.subr.bf16.mxu0 %v4190_v25 }
 0x40d   : > { %3849 = vmatpush3.bf16.msra.mxu0 %v4064_v18 }
 0x40e   : > { %3862 = vmatprep.subr.bf16.mxu0 %v4065_v19 }
 0x45e   : > { %v1977_v31 = vpop.f32.mrb[12].mxu1 }
 0x45f   : > { %v3820_v33 = vpop.f32.mrb[13].mxu1 }
 0x460   : > { %v1980_v34 = vpop.f32.mrb[14].mxu1 }
 0x461   : > { %v3821_v35 = vpop.f32.mrb[15].mxu1  ;;  %v3648_v34 = vld [vmem:[%s4860_s1] ss:$0 sm:$0xff] }
 0x462   : > { %v2023_v36 = vpop.f32.mrb[16].mxu0 }
 0x463   : > { %v3826_v37 = vpop.f32.mrb[17].mxu0 }
 0x464   : > { %v2026_v38 = vpop.f32.mrb[18].mxu0 }
 0x465   : > { %v3827_v39 = vpop.f32.mrb[19].mxu0 }
 0x4d8   : > { %v2069_v40 = vpop.f32.mrb[16].mxu1 }
 0x4d9   : > { %v3832_v41 = vpop.f32.mrb[17].mxu1 }
 0x4da   : > { %v2072_v42 = vpop.f32.mrb[18].mxu1 }
 0x4db   : > { %v3833_v43 = vpop.f32.mrb[19].mxu1  ;;  %v2115_v44 = vpop.f32.mrb[20].mxu0 }
 0x4dc   : > { %v4015_v45 = vpack.i.bf16 %v2115_v44, %v2069_v40  ;;  %v3838_v46 = vpop.f32.mrb[21].mxu0  ;;  %v4066_v44 = vld [vmem:[%s4414_s24 + $0x8] sm:$0xff]   ;;  %s4861_s24 = sld [smem:[#allocation23_spill]] }
 0x4dd   : > { %v2118_v47 = vpop.f32.mrb[22].mxu0 }
 0x4de   : > { %4016 = vrot.lane.b32.xlu0 %v4015_v45, %s4193_s2  ;;  %v3839_v48 = vpop.f32.mrb[23].mxu0  ;;  %v3653_v45 = vld [vmem:[%s1304_s11] ss:$0 sm:$0xff] }
 0x4e2   : > { %s4862_s11 = scalar_lea.vmem %s4861_s24, %s4375_s0 }
 0x4e3   : > { %v3649_v5 = vld [vmem:[%s4862_s11] ss:$0 sm:$0xff] }
 0x550   : > { %v4017_v49 = vpop.permute.xlu0 %4016 }
 0x551   : > { %v4019_v50 = vunpack.i.h.bf16 %v4017_v49  ;;  %v4018_v51 = vunpack.i.l.bf16 %v4017_v49 }
 0x553   : > { %v2130_v52 = vsel %vm1695_vm13, %v2023_v36, %v4019_v50  ;;  %v2129_v53 = vsel %vm1695_vm13, %v1977_v31, %v4018_v51 }
 0x554   : > { %v2131_v54 = vpack.c.bf16 %v2130_v52, %v2129_v53 }
 0x556   : > { %3843 = vmatmul.mubr.msk.bf16.vlgmr.msra.gmra.mrb[20].mxu1 %vm2147_vm15, %v2131_v54 }
 0x557   : > { %3855 = vmatpush3.bf16.msra.mxu1 %v4059_v57  ;;  %3858 = vmatprep.mubr.msk.bf16.mxu1 %vm1486_vm12, %v4061_v63 }
 0x558   : > { %3856 = vmatprep.subr.bf16.mxu1 %v4060_v61 }
 0x55b   : > { %3857 = vmatpush3.bf16.msra.mxu1 %v4060_v61  ;;  %v3660_v61 = vld [vmem:[%s1312_s29] ss:$0 sm:$0xff] }
 0x55c   : > { %3870 = vmatprep.subr.bf16.mxu1 %v4190_v25 }
 0x55e   : > { %3859 = vmatmul.mubr.msk.bf16.vlgmr.msra.gmra.mrb[24].mxu1 %vm1486_vm12, %v4062_v16 }
 0x55f   : > { %3872 = vmatprep.mubr.msk.bf16.mxu1 %vm4191_vm11, %v4190_v25 }
 0x629   : > { %v2185_v56 = vpop.f32.mrb[20].mxu1 }
 0x62a   : > { %v2186_v58 = vadd.f32 %v3644_v55, %v2185_v56  ;;  %v3844_v59 = vpop.f32.mrb[21].mxu1 }
 0x62b   : > { %v2188_v60 = vpop.f32.mrb[22].mxu1 }
 0x62c   : > { %v2189_v62 = vadd.f32 %v3644_v55, %v2188_v60  ;;  %v3845_v0 = vpop.f32.mrb[23].mxu1  ;;  %v2192_v1 = vadd.f32 %v2186_v58, %v4455_v28 }
 0x62e   : > { %v2196_v2 = vsel %vm1486_vm12, %v2192_v1, 0.0  ;;  %v2193_v3 = vadd.f32 %v2189_v62, %v4457_v29 }
 0x62f   : > { %2197 = vadd.xlane.f32.xlu1 %v2196_v2 }
 0x630   : > { %v2199_v4 = vsel %vm1486_vm12, %v2193_v3, 0.0 }
 0x631   : > { %2200 = vadd.xlane.f32.xlu0 %v2199_v4  ;;  %v3860_v46 = vpop.f32.mrb[24].mxu1 }
 0x632   : > { %v2401_v47 = vadd.f32 %v3860_v46, %v3653_v45  ;;  %v2392_v48 = vpop.f32.mrb[25].mxu1 }
 0x633   : > { %v2393_v49 = vadd.f32 %v3653_v45, %v2392_v48  ;;  %v3861_v50 = vpop.f32.mrb[26].mxu1 }
 0x634   : > { %v2404_v51 = vadd.f32 %v3861_v50, %v3653_v45  ;;  %v2395_v52 = vpop.f32.mrb[27].mxu1 }
 0x635   : > { %v2396_v53 = vadd.f32 %v3653_v45, %v2395_v52 }
 0x636   : > { %v4027_v54 = vpack.i.bf16 %v2404_v51, %v2401_v47  ;;  %v2508_v55 = vpack.c.bf16 %v2404_v51, %v2401_v47 }
 0x637   : > { %v4022_v56 = vpack.i.bf16 %v2396_v53, %v2393_v49  ;;  %v2507_v58 = vpack.c.bf16 %v2396_v53, %v2393_v49 }
 0x638   : > { %v2581_v59 = vsel %vm1695_vm13, %v2508_v55, 0 }
 0x639   : > { %v2535_v60 = vsel %vm1695_vm13, %v2507_v58, 0 }
 0x63a   : > { %3871 = vmatpush3.bf16.xpose.msra.mxu1 %v2535_v60 }
 0x63b   : > { %3882 = vmatprep.subr.bf16.mxu1 %v4190_v25 }
 0x647   : > { %2246 = vperm.xlu0 %4021, %v1425_v6  }
 0x6bc   : > { %v2198_v7 = vpop.xlane.xlu1 %2197 }
 0x6bd   : > { %v2203_v8 = vmul.f32 0.03125, %v2198_v7 }
 0x6be   : > { %v2201_v9 = vpop.xlane.xlu0 %2200 }
 0x6bf   : > { %v2205_v28 = vsub.f32 %v2192_v1, %v2203_v8  ;;  %v2204_v10 = vmul.f32 0.03125, %v2201_v9 }
 0x6c1   : > { %v2206_v11 = vsub.f32 %v2193_v3, %v2204_v10  ;;  %v2207_v29 = vmul.f32 %v2205_v28, %v2205_v28 }
 0x6c3   : > { %v2209_v12 = vsel %vm1486_vm12, %v2207_v29, 0.0  ;;  %v2208_v13 = vmul.f32 %v2206_v11, %v2206_v11 }
 0x6c4   : > { %2210 = vadd.xlane.f32.xlu1 %v2209_v12 }
 0x6c5   : > { %v2212_v14 = vsel %vm1486_vm12, %v2208_v13, 0.0 }
 0x6c6   : > { %v4590_v39 = vpop.permute.xlu0 %2246 }
 0x6c8   : > { %2213 = vadd.xlane.f32.xlu1 %v2212_v14 }
 0x6d9   : > { %2241 = vperm.xlu1 %4020, %v1424_v15  }
 0x6dd   : > { %4023 = vrot.lane.b32.xlu1 %v4022_v56, %s4192_s7 }
 0x6e1   : > { %4028 = vrot.lane.b32.xlu1 %v4027_v54, %s4192_s7 }
 0x751   : > { %v2211_v20 = vpop.xlane.xlu1 %2210 }
 0x752   : > { %v2215_v21 = vmul.f32 0.03125, %v2211_v20 }
 0x754   : > { %v2217_v22 = vadd.f32 1e-05, %v2215_v21 }
 0x755   : > { %v2214_v23 = vpop.xlane.xlu1 %2213 }
 0x756   : > { %4090 = vrsqrt.f32 %v2217_v22  ;;  %v2216_v24 = vmul.f32 0.03125, %v2214_v23 }
 0x758   : > { %v2218_v26 = vadd.f32 1e-05, %v2216_v24 }
 0x759   : > { %v4588_v38 = vpop.permute.xlu1 %2241 }
 0x75a   : > { %4092 = vrsqrt.f32 %v2218_v26 }
 0x75d   : > { %v4024_v62 = vpop.permute.xlu1 %4023 }
 0x75e   : > { %v4026_v1 = vunpack.i.h.bf16 %v4024_v62  ;;  %v4025_v2 = vunpack.i.l.bf16 %v4024_v62 }
 0x760   : > { %v4091_v27 = vpop.eup %4090  ;;  %v2509_v6 = vpack.c.bf16 %v4026_v1, %v4025_v2 }
 0x761   : > { %v2221_v31 = vmul.f32 %v4091_v27, %v2205_v28  ;;  %v4029_v0 = vpop.permute.xlu1 %4028 }
 0x762   : > { %v4031_v3 = vunpack.i.h.bf16 %v4029_v0  ;;  %v4030_v4 = vunpack.i.l.bf16 %v4029_v0  ;;  %v2627_v13 = vsel %vm1695_vm13, %v2509_v6, 0 }
 0x763   : > { %v2229_v32 = vmul.f32 %v3647_v30, %v2221_v31 }
 0x764   : > { %v4093_v33 = vpop.eup %4092  ;;  %v2510_v28 = vpack.c.bf16 %v4031_v3, %v4030_v4 }
 0x765   : > { %v2222_v35 = vmul.f32 %v4093_v33, %v2206_v11  ;;  %v2237_v36 = vadd.f32 %v3648_v34, %v2229_v32 }
 0x766   : > { %v2673_v57 = vsel %vm1695_vm13, %v2510_v28, 0 }
 0x767   : > { %v2230_v37 = vmul.f32 %v3647_v30, %v2222_v35  ;;  %v4593_v41 = vmul.f32 %v4588_v38, %v2237_v36  ;;  %v4195_v35 = vmov 1966171168  }
 0x768   : > { %v1439_v36 = vunpack.c.l.s4 %v4195_v35 }
 0x769   : > { %v2238_v40 = vadd.f32 %v3648_v34, %v2230_v37  ;;  %v1441_v37 = vlaneseq }
 0x76b   : > { %v4596_v42 = vmul.f32 %v4590_v39, %v2238_v40  ;;  %v1440_v40 = vunpack.c.0.s8 %v1439_v36 }
 0x76d   : > { %v2251_v43 = vpack.c.bf16 %v4596_v42, %v4593_v41 }
 0x76f   : > { %3851 = vmatmul.mubr.msk.bf16.vlgmr.msra.gmra.mrb[24].mxu0 %vm1486_vm12, %v2251_v43  ;;  %v1442_v43 = vshrl.u32 %v1441_v37, 7 }
 0x770   : > { %3863 = vmatpush3.bf16.msra.mxu0 %v4065_v19  ;;  %3866 = vmatprep.mubr.msk.bf16.mxu0 %vm1486_vm12, %v4061_v63 }
 0x771   : > { %3864 = vmatprep.subr.bf16.mxu0 %v4066_v44  ;;  %v1443_v45 = vsub.s32 %v1440_v40, %v1442_v43  ;;  %v1454_v48 = vsub.s32 0, %v1442_v43 }
 0x774   : > { %3865 = vmatpush3.bf16.msra.mxu0 %v4066_v44  ;;  %v3623_v44 = vld.sshfl [vmem:[#allocation3] sm:$0x11 pattern:$0x75316420] }
 0x775   : > { %3876 = vmatprep.subr.bf16.mxu0 %v4190_v25  ;;  %v1437_v46 = vcombine.high %v3623_v44, %v3623_v44  ;;  %v1444_v47 = vrot.slane %v3623_v44, %v1443_v45 }
 0x777   : > { %3867 = vmatmul.mubr.msk.bf16.vlgmr.msra.gmra.mrb[28].mxu0 %vm1486_vm12, %v4062_v16  ;;  %v1451_v49 = vrot.slane %v1437_v46, %v1443_v45  ;;  %v1455_v50 = vrot.slane %v1444_v47, %v1454_v48 }
 0x778   : > { %3878 = vmatprep.mubr.msk.bf16.mxu0 %vm4191_vm11, %v4190_v25 }
 0x779   : > { %v1459_v54 = vrot.slane %v1451_v49, %v1454_v48 }
 0x77d   : > { %3877 = vmatpush3.bf16.xpose.msra.mxu0 %v2581_v59 }
 0x77e   : > { %3888 = vmatprep.subr.bf16.mxu0 %v4190_v25 }
 0x842   : > { %v2312_v7 = vpop.f32.mrb[24].mxu0 }
 0x843   : > { %v2313_v8 = vadd.f32 %v3649_v5, %v2312_v7  ;;  %v3852_v9 = vpop.f32.mrb[25].mxu0 }
 0x844   : > { %v2315_v10 = vpop.f32.mrb[26].mxu0 }
 0x845   : > { %v2487_v11 = vpack.c.bf16 %v2313_v8, %v2313_v8  ;;  %v2316_v29 = vadd.f32 %v3649_v5, %v2315_v10  ;;  %v3853_v12 = vpop.f32.mrb[27].mxu0 }
 0x847   : > { %v4032_v14 = vpack.i.bf16 %v2316_v29, %v2313_v8  ;;  %v2488_v15 = vpack.c.bf16 %v2316_v29, %v2316_v29  ;;  %3873 = vmatmul.mubr.msk.bf16.vlgmr.msra.gmra.mrb[28].mxu1 %vm1695_vm13, %v2487_v11 }
 0x848   : > { %3883 = vmatpush3.bf16.xpose.msra.mxu1 %v2627_v13  ;;  %3884 = vmatprep.mubr.msk.bf16.mxu1 %vm4191_vm11, %v4190_v25 }
 0x849   : > { %4033 = vrot.lane.b32.xlu1 %v4032_v14, %s4192_s7  ;;  %3879 = vmatmul.mubr.msk.bf16.vlgmr.msra.gmra.mrb[32].mxu0 %vm1695_vm13, %v2488_v15 }
 0x84a   : > { %3889 = vmatpush3.bf16.xpose.msra.mxu0 %v2673_v57  ;;  %3890 = vmatprep.mubr.msk.bf16.mxu0 %vm4191_vm11, %v4190_v25  ;;  %v3868_v63 = vpop.f32.mrb[28].mxu0 }
 0x84b   : > { %v4631_v16 = vadd.f32 %v3868_v63, %v3660_v61  ;;  %v2464_v17 = vpop.f32.mrb[29].mxu0  ;;  %3894 = vmatprep.subr.bf16.mxu1 %v4190_v25  ;;  %3900 = vmatprep.subr.bf16.mxu0 %v4190_v25 }
 0x84c   : > { %v3869_v18 = vpop.f32.mrb[30].mxu0  ;;  %v4641_v22 = vadd.f32 %v3660_v61, %v2464_v17 }
 0x84d   : > { %v4635_v19 = vadd.f32 %v3869_v18, %v3660_v61  ;;  %v2467_v23 = vpop.f32.mrb[31].mxu0 }
 0x84e   : > { %v4643_v24 = vadd.f32 %v3660_v61, %v2467_v23 }
 0x84f   : > { %v4042_v20 = vpack.i.bf16 %v4635_v19, %v4631_v16  ;;  %v2528_v21 = vpack.c.bf16 %v4635_v19, %v4631_v16 }
 0x850   : > { %v4037_v26 = vpack.i.bf16 %v4643_v24, %v4641_v22  ;;  %v2527_v27 = vpack.c.bf16 %v4643_v24, %v4641_v22 }
 0x8bb   : > { %v4034_v30 = vpop.permute.xlu1 %4033 }
 0x8bc   : > { %v4036_v31 = vunpack.i.h.bf16 %v4034_v30  ;;  %v4035_v32 = vunpack.i.l.bf16 %v4034_v30 }
 0x8be   : > { %v2490_v33 = vpack.c.bf16 %v4036_v31, %v4036_v31  ;;  %v2489_v34 = vpack.c.bf16 %v4035_v32, %v4035_v32 }
 0x8c0   : > { %3885 = vmatmul.mubr.msk.bf16.vlgmr.msra.gmra.mrb[32].mxu1 %vm1695_vm13, %v2489_v34  ;;  %3891 = vmatmul.mubr.msk.bf16.vlgmr.msra.gmra.mrb[36].mxu0 %vm1695_vm13, %v2490_v33 }
 0x8c1   : > { %3895 = vmatpush3.bf16.msra.mxu1 %v2527_v27  ;;  %3901 = vmatpush3.bf16.msra.mxu0 %v2528_v21 }
 0x8c2   : > { %3896 = vmatprep.mubr.msk.bf16.mxu1 %vm4191_vm11, %v4190_v25  ;;  %3902 = vmatprep.mubr.msk.bf16.mxu0 %vm4191_vm11, %v4190_v25 }
 0x8c3   : > { %3906 = vmatprep.subr.bf16.mxu1 %v4190_v25  ;;  %3912 = vmatprep.subr.bf16.mxu0 %v4190_v25 }
 0x91a   : > { %v2571_v51 = vpop.f32.mrb[28].mxu1 }
 0x91b   : > { %v2715_v52 = vmul.f32 0.35355338, %v2571_v51  ;;  %v3874_v53 = vpop.f32.mrb[29].mxu1 }
 0x91c   : > { %v2574_v55 = vpop.f32.mrb[30].mxu1  ;;  %v2617_v56 = vpop.f32.mrb[32].mxu0 }
 0x91d   : > { %v2716_v58 = vmul.f32 0.35355338, %v2617_v56  ;;  %v3875_v59 = vpop.f32.mrb[31].mxu1  ;;  %v3880_v60 = vpop.f32.mrb[33].mxu0  ;;  %v2719_v62 = vadd.f32 %v2715_v52, %v1455_v50 }
 0x91e   : > { %v2620_v0 = vpop.f32.mrb[34].mxu0 }
 0x91f   : > { %v3881_v1 = vpop.f32.mrb[35].mxu0  ;;  %v2723_v2 = vsel %vm2147_vm15, %v2719_v62, -inf  ;;  %v2720_v3 = vadd.f32 %v2716_v58, %v1459_v54 }
 0x920   : > { %2724 = vmax.xlane.f32.xlu1 %v2723_v2 }
 0x921   : > { %v2726_v4 = vsel %vm2147_vm15, %v2720_v3, -inf }
 0x922   : > { %2727 = vmax.xlane.f32.xlu0 %v2726_v4 }
 0x993   : > { %v2663_v5 = vpop.f32.mrb[32].mxu1  ;;  %v2709_v6 = vpop.f32.mrb[36].mxu0 }
 0x994   : > { %v2717_v7 = vmul.f32 0.35355338, %v2663_v5  ;;  %v2718_v8 = vmul.f32 0.35355338, %v2709_v6  ;;  %v3886_v9 = vpop.f32.mrb[33].mxu1  ;;  %v3892_v28 = vpop.f32.mrb[37].mxu0 }
 0x995   : > { %v2666_v10 = vpop.f32.mrb[34].mxu1  ;;  %v2712_v11 = vpop.f32.mrb[38].mxu0  ;;  %v4067_v5 = vld [vmem:[%s4419_s25] sm:$0xff]  }
 0x996   : > { %v3887_v29 = vpop.f32.mrb[35].mxu1  ;;  %v3893_v12 = vpop.f32.mrb[39].mxu0  ;;  %v2721_v13 = vadd.f32 %v2717_v7, %v1455_v50  ;;  %v2722_v15 = vadd.f32 %v2718_v8, %v1459_v54 }
 0x998   : > { %v2729_v14 = vsel %vm2147_vm15, %v2721_v13, -inf  ;;  %v2732_v57 = vsel %vm2147_vm15, %v2722_v15, -inf }
 0x999   : > { %2730 = vmax.xlane.f32.xlu1 %v2729_v14 }
 0x99d   : > { %2733 = vmax.xlane.f32.xlu1 %v2732_v57 }
 0x9ad   : > { %v2725_v61 = vpop.xlane.xlu1 %2724 }
 0x9ae   : > { %v2735_v63 = vsub.f32 %v2719_v62, %v2725_v61 }
 0x9af   : > { %v2728_v17 = vpop.xlane.xlu0 %2727 }
 0x9b0   : > { %v2739_v18 = vmul.f32 1.442695, %v2735_v63  ;;  %v2736_v21 = vsub.f32 %v2720_v3, %v2728_v17 }
 0x9b2   : > { %4094 = vpow2.f32 %v2739_v18  ;;  %v2741_v23 = vmul.f32 1.442695, %v2736_v21 }
 0x9b4   : > { %4096 = vpow2.f32 %v2741_v23 }
 0x9bc   : > { %v4095_v27 = vpop.eup %4094 }
 0x9bd   : > { %v2747_v30 = vsel %vm2147_vm15, %v4095_v27, 0.0 }
 0x9be   : > { %v4097_v31 = vpop.eup %4096  ;;  %2748 = vadd.xlane.f32.xlu1 %v2747_v30 }
 0x9bf   : > { %v2750_v32 = vsel %vm2147_vm15, %v4097_v31, 0.0 }
 0x9c2   : > { %2751 = vadd.xlane.f32.xlu1 %v2750_v32  ;;  %v3673_v32 = vld [vmem:[%s1320_s30] ss:$0 sm:$0xff] }
 0xa26   : > { %v2731_v33 = vpop.xlane.xlu1 %2730 }
 0xa27   : > { %v2737_v34 = vsub.f32 %v2721_v13, %v2731_v33 }
 0xa29   : > { %v2743_v35 = vmul.f32 1.442695, %v2737_v34 }
 0xa2a   : > { %v2734_v36 = vpop.xlane.xlu1 %2733 }
 0xa2b   : > { %4098 = vpow2.f32 %v2743_v35  ;;  %v2738_v37 = vsub.f32 %v2722_v15, %v2734_v36 }
 0xa2d   : > { %v2745_v40 = vmul.f32 1.442695, %v2738_v37 }
 0xa2f   : > { %4100 = vpow2.f32 %v2745_v40 }
 0xa35   : > { %v4099_v43 = vpop.eup %4098 }
 0xa36   : > { %v2753_v44 = vsel %vm2147_vm15, %v4099_v43, 0.0 }
 0xa37   : > { %2754 = vadd.xlane.f32.xlu0 %v2753_v44 }
 0xa39   : > { %v4101_v45 = vpop.eup %4100 }
 0xa3a   : > { %v2756_v46 = vsel %vm2147_vm15, %v4101_v45, 0.0 }
 0xa3b   : > { %2757 = vadd.xlane.f32.xlu1 %v2756_v46 }
 0xa4b   : > { %v2749_v47 = vpop.xlane.xlu1 %2748 }
 0xa4c   : > { %4102 = vrcp.f32 %v2749_v47  ;;  %4043 = vrot.lane.b32.xlu1 %v4042_v20, %s4192_s7 }
 0xa4d   : > { %4038 = vrot.lane.b32.xlu0 %v4037_v26, %s4192_s7 }
 0xa4f   : > { %v2752_v48 = vpop.xlane.xlu1 %2751 }
 0xa50   : > { %4104 = vrcp.f32 %v2752_v48 }
 0xa56   : > { %v4103_v49 = vpop.eup %4102 }
 0xa57   : > { %v2763_v50 = vmul.f32 %v4103_v49, %v4095_v27 }
 0xa59   : > { %v2767_v51 = vpack.c.bf16 %v2763_v50, %v2763_v50 }
 0xa5a   : > { %v4105_v52 = vpop.eup %4104 }
 0xa5b   : > { %v2764_v53 = vmul.f32 %v4105_v52, %v4097_v31  ;;  %3897 = vmatmul.mubr.msk.bf16.vlgmr.msra.gmra.mrb[36].mxu1 %vm2147_vm15, %v2767_v51 }
 0xa5c   : > { %3908 = vmatprep.mubr.msk.bf16.mxu1 %vm4191_vm11, %v4190_v25 }
 0xa5d   : > { %v2768_v54 = vpack.c.bf16 %v2764_v53, %v2764_v53 }
 0xa5f   : > { %3903 = vmatmul.mubr.msk.bf16.vlgmr.msra.gmra.mrb[40].mxu0 %vm2147_vm15, %v2768_v54 }
 0xa60   : > { %3914 = vmatprep.mubr.msk.bf16.mxu0 %vm4191_vm11, %v4190_v25 }
 0xac4   : > { %v2755_v16 = vpop.xlane.xlu0 %2754 }
 0xac5   : > { %4106 = vrcp.f32 %v2755_v16  ;;  %v4068_v16 = vld [vmem:[%s4428_s12] sm:$0xff]  }
 0xac8   : > { %v2758_v19 = vpop.xlane.xlu1 %2757  ;;  %v4039_v20 = vpop.permute.xlu0 %4038 }
 0xac9   : > { %4108 = vrcp.f32 %v2758_v19  ;;  %v4041_v22 = vunpack.i.h.bf16 %v4039_v20  ;;  %v4040_v24 = vunpack.i.l.bf16 %v4039_v20  ;;  %v4069_v19 = vld [vmem:[%s4428_s12 + $0x8] sm:$0xff]   ;;  %v4070_v20 = vld [vmem:[%s4436_s23] sm:$0xff]  }
 0xacb   : > { %v2529_v26 = vpack.c.bf16 %v4041_v22, %v4040_v24  ;;  %v4071_v22 = vld [vmem:[%s4436_s23 + $0x8] sm:$0xff]  }
 0xacc   : > { %v4044_v55 = vpop.permute.xlu1 %4043 }
 0xacd   : > { %v4046_v56 = vunpack.i.h.bf16 %v4044_v55  ;;  %v4045_v58 = vunpack.i.l.bf16 %v4044_v55  ;;  %3907 = vmatpush3.bf16.msra.mxu1 %v2529_v26 }
 0xace   : > { %3918 = vmatprep.subr.bf16.mxu1 %v4190_v25 }
 0xacf   : > { %v4107_v59 = vpop.eup %4106  ;;  %v2530_v60 = vpack.c.bf16 %v4046_v56, %v4045_v58 }
 0xad0   : > { %v2765_v62 = vmul.f32 %v4107_v59, %v4099_v43 }
 0xad1   : > { %3913 = vmatpush3.bf16.msra.mxu0 %v2530_v60 }
 0xad2   : > { %v2769_v0 = vpack.c.bf16 %v2765_v62, %v2765_v62  ;;  %3924 = vmatprep.subr.bf16.mxu0 %v4190_v25  ;;  %v3676_v62 = vld [vmem:[%s1323_s3] ss:$0 sm:$0xff] }
 0xad3   : > { %v4109_v1 = vpop.eup %4108 }
 0xad4   : > { %v2766_v2 = vmul.f32 %v4109_v1, %v4101_v45  ;;  %3909 = vmatmul.mubr.msk.bf16.vlgmr.msra.gmra.mrb[40].mxu1 %vm2147_vm15, %v2769_v0 }
 0xad5   : > { %3920 = vmatprep.mubr.msk.bf16.mxu1 %vm4191_vm11, %v4190_v25  ;;  %3919 = vmatpush3.bf16.msra.mxu1 %v4067_v5 }
 0xad6   : > { %v2770_v3 = vpack.c.bf16 %v2766_v2, %v2766_v2  ;;  %3932 = vmatprep.subr.bf16.mxu1 %v4190_v25 }
 0xad8   : > { %3915 = vmatmul.mubr.msk.bf16.vlgmr.msra.gmra.mrb[44].mxu0 %vm2147_vm15, %v2770_v3  ;;  %v3677_v3 = vld [vmem:[%s1326_s6] ss:$0 sm:$0xff]  ;;  %s4870_s6 = sld [smem:[#allocation38_spill]] }
 0xad9   : > { %3928 = vmatprep.mubr.msk.bf16.mxu0 %vm4191_vm11, %v4190_v25  ;;  %3925 = vmatpush3.bf16.msra.mxu0 %v4068_v16 }
 0xada   : > { %3926 = vmatprep.subr.bf16.mxu0 %v4190_v25 }
 0xadd   : > { %3927 = vmatpush3.bf16.msra.mxu0 %v4069_v19  ;;  %v3688_v19 = vld [vmem:[%s1345_s27] ss:$0 sm:$0xff] }
 0xade   : > { %p3948_p5 = scmp.eq.s32.totalorder %s4870_s6, 1 }
 0xb2e   : > { %v2808_v4 = vpop.f32.mrb[36].mxu1 }
 0xb2f   : > { %v3898_v6 = vpop.f32.mrb[37].mxu1 }
 0xb30   : > { %v2811_v7 = vpop.f32.mrb[38].mxu1 }
 0xb31   : > { %v3899_v8 = vpop.f32.mrb[39].mxu1 }
 0xb32   : > { %v2851_v9 = vpop.f32.mrb[40].mxu0 }
 0xb33   : > { %v3904_v28 = vpop.f32.mrb[41].mxu0 }
 0xb34   : > { %v2854_v10 = vpop.f32.mrb[42].mxu0 }
 0xb35   : > { %v3905_v11 = vpop.f32.mrb[43].mxu0  ;;  %v4072_v10 = vld [vmem:[%s4436_s23 + $0x10] sm:$0xff]  }
 0xb36   : > { %v4073_v11 = vld [vmem:[%s4436_s23 + $0x18] sm:$0xff]   ;;  %s4196_s23 = smov [#allocation4]  }
 0xba7   : > { %v2894_v29 = vpop.f32.mrb[40].mxu1 }
 0xba8   : > { %v3910_v12 = vpop.f32.mrb[41].mxu1 }
 0xba9   : > { %v2897_v13 = vpop.f32.mrb[42].mxu1 }
 0xbaa   : > { %v3911_v14 = vpop.f32.mrb[43].mxu1 }
 0xbab   : > { %v2937_v15 = vpop.f32.mrb[44].mxu0 }
 0xbac   : > { %v4047_v57 = vpack.i.bf16 %v2937_v15, %v2894_v29  ;;  %v3916_v61 = vpop.f32.mrb[45].mxu0  ;;  %v3678_v29 = vld [vmem:[%s1334_s16] ss:$0 sm:$0xff]  ;;  %s3272_s16 = sshll.u32 %s4196_s23, 4  ;;  %s3273_s16 = int_to_ptr.vmem [resolvable:$true] %s3272_s16 }
 0xbad   : > { %v2940_v63 = vpop.f32.mrb[46].mxu0  ;;  %s4118_s27 = scalar_lea.vmem %s3273_s16, 256  ;;  %p4125_p9 = scmp.lt.s32.totalorder %s3273_s16, %s3273_s16 }
 0xbae   : > { %v3917_v17 = vpop.f32.mrb[47].mxu0  ;;  %4048 = vrot.lane.b32.xlu1 %v4047_v57, %s4193_s2  ;;  %p4119_p6 = scmp.ne.s32.totalorder %s3273_s16, %s4118_s27  ;;  %p4126_p10 = scmp.lt.s32.totalorder %s4118_s27, %s4118_s27 }
 0xbb0   : > { %p4120_p7 = pnand %p4119_p6, %p3948_p5  ;;  %p4127_p11 = por %p4126_p10, %p4125_p9 }
 0xbb2   : > { %p4121_p8 = pneg %p4120_p7 }
 0xbb4   : > { %p4128_p12 = pnand %p4127_p11, %p4121_p8 }
 0xc20   : > { %v4049_v18 = vpop.permute.xlu1 %4048 }
 0xc21   : > { %v4051_v21 = vunpack.i.h.bf16 %v4049_v18  ;;  %v4050_v23 = vunpack.i.l.bf16 %v4049_v18 }
 0xc23   : > { %v2952_v27 = vsel %vm1695_vm13, %v2851_v9, %v4051_v21  ;;  %v2951_v30 = vsel %vm1695_vm13, %v2808_v4, %v4050_v23  ;;  %v3682_v21 = vld [vmem:[%s1342_s14] ss:$0 sm:$0xff] }
 0xc24   : > { %v2953_v31 = vpack.c.bf16 %v2952_v27, %v2951_v30 }
 0xc26   : > { %3921 = vmatmul.mubr.msk.bf16.vlgmr.msra.gmra.mrb[44].mxu1 %vm2147_vm15, %v2953_v31 }
 0xc27   : > { %3940 = vmatprep.mubr.msk.bf16.mxu1 %vm4191_vm11, %v4190_v25  ;;  %3933 = vmatpush3.bf16.msra.mxu1 %v4070_v20 }
 0xc28   : > { %3934 = vmatprep.subr.bf16.mxu1 %v4190_v25 }
 0xc2b   : > { %3935 = vmatpush3.bf16.msra.mxu1 %v4071_v22 }
 0xc2c   : > { %3936 = vmatprep.subr.bf16.mxu1 %v4190_v25 }
 0xc2f   : > { %3937 = vmatpush3.bf16.msra.mxu1 %v4072_v10 }
 0xc30   : > { %3938 = vmatprep.subr.bf16.mxu1 %v4190_v25 }
 0xc33   : > { %3939 = vmatpush3.bf16.msra.mxu1 %v4073_v11 }
 0xcf9   : > { %v3006_v33 = vpop.f32.mrb[44].mxu1 }
 0xcfa   : > { %v3007_v34 = vadd.f32 %v3673_v32, %v3006_v33  ;;  %v3922_v35 = vpop.f32.mrb[45].mxu1 }
 0xcfb   : > { %v3009_v36 = vpop.f32.mrb[46].mxu1 }
 0xcfc   : > { %v3010_v37 = vadd.f32 %v3673_v32, %v3009_v36  ;;  %v3923_v40 = vpop.f32.mrb[47].mxu1  ;;  %v3013_v43 = vadd.f32 %v3007_v34, %v4593_v41 }
 0xcfe   : > { %v3017_v44 = vsel %vm1486_vm12, %v3013_v43, 0.0  ;;  %v3014_v45 = vadd.f32 %v3010_v37, %v4596_v42 }
 0xcff   : > { %3018 = vadd.xlane.f32.xlu0 %v3017_v44 }
 0xd00   : > { %v3020_v46 = vsel %vm1486_vm12, %v3014_v45, 0.0 }
 0xd01   : > { %3021 = vadd.xlane.f32.xlu1 %v3020_v46 }
 0xd8c   : > { %v3019_v47 = vpop.xlane.xlu0 %3018 }
 0xd8d   : > { %v3023_v48 = vmul.f32 0.03125, %v3019_v47 }
 0xd8e   : > { %v3022_v49 = vpop.xlane.xlu1 %3021 }
 0xd8f   : > { %v3025_v50 = vsub.f32 %v3013_v43, %v3023_v48  ;;  %v3024_v51 = vmul.f32 0.03125, %v3022_v49 }
 0xd91   : > { %v3026_v52 = vsub.f32 %v3014_v45, %v3024_v51  ;;  %v3027_v53 = vmul.f32 %v3025_v50, %v3025_v50 }
 0xd93   : > { %v3029_v41 = vsel %vm1486_vm12, %v3027_v53, 0.0  ;;  %v3028_v54 = vmul.f32 %v3026_v52, %v3026_v52 }
 0xd94   : > { %3030 = vadd.xlane.f32.xlu0 %v3029_v41 }
 0xd95   : > { %v3032_v42 = vsel %vm1486_vm12, %v3028_v54, 0.0 }
 0xd98   : > { %3033 = vadd.xlane.f32.xlu0 %v3032_v42 }
 0xe21   : > { %v3031_v24 = vpop.xlane.xlu0 %3030 }
 0xe22   : > { %v3035_v26 = vmul.f32 0.03125, %v3031_v24  ;;  %v3689_v24 = vld [vmem:[%s1348_s4] ss:$0 sm:$0xff] }
 0xe24   : > { %v3037_v55 = vadd.f32 1e-05, %v3035_v26 }
 0xe25   : > { %v3034_v56 = vpop.xlane.xlu0 %3033 }
 0xe26   : > { %4110 = vrsqrt.f32 %v3037_v55  ;;  %v3036_v58 = vmul.f32 0.03125, %v3034_v56 }
 0xe28   : > { %v3038_v59 = vadd.f32 1e-05, %v3036_v58 }
 0xe2a   : > { %4112 = vrsqrt.f32 %v3038_v59 }
 0xe30   : > { %v4111_v60 = vpop.eup %4110 }
 0xe31   : > { %v3041_v0 = vmul.f32 %v4111_v60, %v3025_v50 }
 0xe33   : > { %v3049_v1 = vmul.f32 %v3676_v62, %v3041_v0 }
 0xe34   : > { %v4113_v2 = vpop.eup %4112 }
 0xe35   : > { %v3042_v4 = vmul.f32 %v4113_v2, %v3026_v52  ;;  %v3057_v6 = vadd.f32 %v3677_v3, %v3049_v1 }
 0xe37   : > { %v3050_v5 = vmul.f32 %v3676_v62, %v3042_v4  ;;  %v3059_v8 = vmul.f32 %v3057_v6, %v4588_v38 }
 0xe39   : > { %v3058_v7 = vadd.f32 %v3677_v3, %v3050_v5 }
 0xe3b   : > { %v3060_v9 = vmul.f32 %v3058_v7, %v4590_v39 }
 0xe3d   : > { %v3061_v28 = vpack.c.bf16 %v3060_v9, %v3059_v8 }
 0xe3f   : > { %3929 = vmatmul.mubr.msk.bf16.vlgmr.msra.gmra.mrb[48].mxu0 %vm1486_vm12, %v3061_v28 }
 0xf12   : > { %v3122_v12 = vpop.f32.mrb[48].mxu0 }
 0xf13   : > { %v3123_v13 = vadd.f32 %v3678_v29, %v3122_v12  ;;  %v3930_v14 = vpop.f32.mrb[49].mxu0 }
 0xf14   : > { %v3125_v15 = vpop.f32.mrb[50].mxu0 }
 0xf15   : > { %v3126_v57 = vadd.f32 %v3678_v29, %v3125_v15  ;;  %v3931_v61 = vpop.f32.mrb[51].mxu0  ;;  %v3129_v63 = vmax.f32 %v3123_v13, 0.0 }
 0xf17   : > { %v3130_v17 = vmax.f32 %v3126_v57, 0.0 }
 0xf19   : > { %v3131_v18 = vpack.c.bf16 %v3130_v17, %v3129_v63 }
 0xf1b   : > { %3941 = vmatmul.mubr.msk.bf16.vlgmr.msra.gmra.mrb[48].mxu1 %vm3171_vm0, %v3131_v18 }
 0xfee   : > { %v3209_v23 = vpop.f32.mrb[48].mxu1 }
 0xfef   : > { %v3210_v27 = vadd.f32 %v3682_v21, %v3209_v23  ;;  %v3942_v25 = vpop.f32.mrb[49].mxu1 }
 0xff0   : > { %v3212_v30 = vpop.f32.mrb[50].mxu1 }
 0xff1   : > { %v3213_v31 = vadd.f32 %v3682_v21, %v3212_v30  ;;  %v3943_v32 = vpop.f32.mrb[51].mxu1  ;;  %v3216_v33 = vadd.f32 %v3210_v27, %v3059_v8 }
 0xff3   : > { %v3220_v34 = vsel %vm1486_vm12, %v3216_v33, 0.0  ;;  %v3217_v35 = vadd.f32 %v3213_v31, %v3060_v9 }
 0xff4   : > { %3221 = vadd.xlane.f32.xlu1 %v3220_v34 }
 0xff5   : > { %v3223_v36 = vsel %vm1486_vm12, %v3217_v35, 0.0 }
 0xff6   : > { %3224 = vadd.xlane.f32.xlu0 %v3223_v36 }
0x1081   : > { %v3222_v37 = vpop.xlane.xlu1 %3221 }
0x1082   : > { %v3226_v40 = vmul.f32 0.03125, %v3222_v37 }
0x1083   : > { %v3225_v43 = vpop.xlane.xlu0 %3224 }
0x1084   : > { %v3228_v44 = vsub.f32 %v3216_v33, %v3226_v40  ;;  %v3227_v45 = vmul.f32 0.03125, %v3225_v43 }
0x1086   : > { %v3229_v46 = vsub.f32 %v3217_v35, %v3227_v45  ;;  %v3230_v47 = vmul.f32 %v3228_v44, %v3228_v44 }
0x1088   : > { %v3232_v48 = vsel %vm1486_vm12, %v3230_v47, 0.0  ;;  %v3231_v49 = vmul.f32 %v3229_v46, %v3229_v46 }
0x1089   : > { %3233 = vadd.xlane.f32.xlu1 %v3232_v48 }
0x108a   : > { %v3235_v50 = vsel %vm1486_vm12, %v3231_v49, 0.0 }
0x108b   : > { %3236 = vadd.xlane.f32.xlu0 %v3235_v50 }
0x1116   : > { %v3234_v51 = vpop.xlane.xlu1 %3233 }
0x1117   : > { %v3238_v52 = vmul.f32 0.03125, %v3234_v51 }
0x1118   : > { %v3237_v53 = vpop.xlane.xlu0 %3236 }
0x1119   : > { %v3240_v41 = vadd.f32 1e-05, %v3238_v52  ;;  %v3239_v54 = vmul.f32 0.03125, %v3237_v53 }
0x111b   : > { %4114 = vrsqrt.f32 %v3240_v41  ;;  %v3241_v42 = vadd.f32 1e-05, %v3239_v54 }
0x111d   : > { %4116 = vrsqrt.f32 %v3241_v42 }
0x1125   : > { %v4115_v16 = vpop.eup %4114 }
0x1126   : > { %v3244_v20 = vmul.f32 %v4115_v16, %v3228_v44 }
0x1127   : > { %v4117_v22 = vpop.eup %4116 }
0x1128   : > { %v3252_v26 = vmul.f32 %v3688_v19, %v3244_v20  ;;  %v3245_v55 = vmul.f32 %v4117_v22, %v3229_v46 }
0x112a   : > { %v3253_v56 = vmul.f32 %v3688_v19, %v3245_v55  ;;  %v3260_v58 = vadd.f32 %v3689_v24, %v3252_v26 }
0x112c   : > { %v3261_v59 = vadd.f32 %v3689_v24, %v3253_v56  ;;  %v3262_v60 = vmul.f32 %v3260_v58, %v4588_v38 }
0x112e   : > { %v3263_v62 = vmul.f32 %v3261_v59, %v4590_v39  ;;  %3264 = vst.msk [vmem:[#allocation4] sm:$0xff] %vm1486_vm12, %v3262_v60 }
0x1130   : > { %3265 = vst.msk [vmem:[#allocation4 + $0x8] sm:$0xff] %vm1486_vm12, %v3263_v62 }
0x1131   : > { %4131 = shalt.err (!%p4128_p12)
}
0x1132   : > { %s4871_s4 = sld [smem:[#allocation36_spill]] }
0x1138   : > { %s4132_s0 = scalar_lea.hbm %s4871_s4, 256 }
0x1139   : > { %p4133_p13 = scmp.ne.s32.totalorder %s4871_s4, %s4132_s0  ;;  %p4138_p2 = scmp.lt.u32.totalorder %s4132_s0, %s4871_s4 }
0x113b   : > { %p4134_p0 = pnand %p4133_p13, %p3948_p5 }
0x113d   : > { %p4135_p1 = pneg %p4134_p0 }
0x113f   : > { %p4140_p3 = pnand %p4138_p2, %p4135_p1 }
0x1141   : > { %4143 = shalt.err (!%p4140_p3)
}
0x1142   : > { %s4197_s7 = smov 128  }
0x1143   : > { %3945 = dma.vmem_to_hbm [thread:$0]  (%p3948_p5), %s3273_s16, 256, %s4871_s4, [#allocation5], %s4197_s7, %s4197_s7, %s4193_s2  }
0x1144   : > { %4149 = dma.done.wait (%p3948_p5), [#allocation5], 256  }
0x1145   : > { %4151 = vsyncadd (%p3948_p5), [#allocation5], 4294967040 }
0x1146 PF: > { %s4872_s15 = sld [smem:[#allocation37_spill]] }
0x114c   : > { %s74_s22 = sadd.s32 1, %s4872_s15  }
0x114d   : > { %p71_p4 = scmp.ge.s32.totalorder %s74_s22, 4  }
0x114f   :  { %73 = sbr.rel (!%p71_p4) target bundleno = 73 (0x49), region = 281 }
0x1156   :  { %3288 = vsyncpa [#allocation5], 1 }
0x1157   :  { %3290 = vsyncpa [#allocation5 + $0x1], 1 }

</bundles_post_ra>
